<compile_context>
chip_gen: v6e
topology: v6e:2x2x1
jax: 0.10.0
libtpu: 0.0.40
codegen_flags: <defaults>
</compile_context>

<pallas_src>
import functools

import jax
import jax.numpy as jnp
import numpy as np
from jax.experimental import pallas as pl
from jax.experimental.pallas import tpu as pltpu


def _attention_kernel(x_ref, wqkv_ref, wout_ref, bout_ref, o_ref,
                      *, heads, dim_head, scale):
    # x_ref:    (B, C, N)       bf16, native layout (channels on sublanes)
    # wqkv_ref: (3*hid, C)      bf16, native Conv1d(k=1) weight (no bias)
    # wout_ref: (dim_out, hid)  bf16, native Conv1d(k=1) weight
    # bout_ref: (dim_out, 1)    f32 output bias
    # o_ref:    (B, dim_out, N) f32
    B = x_ref.shape[0]
    N = x_ref.shape[2]
    hid = heads * dim_head

    # Pack the whole batch into one lane-dense slab: (C, B*N).
    x_all = jnp.concatenate([x_ref[b] for b in range(B)], axis=1)       # (C, B*N)

    # One QKV projection for the whole batch (canonical MXU matmul, K=C).
    qkv = jax.lax.dot_general(
        wqkv_ref[...], x_all, (((1,), (0,)), ((), ())),
        preferred_element_type=jnp.float32)                              # (3*hid, B*N) f32

    # q transposed ONCE so the per-head sim matmul is fully canonical.
    q_t = jnp.transpose(qkv[:hid]).astype(jnp.bfloat16)                  # (B*N, hid)
    k_all = qkv[hid:2 * hid].astype(jnp.bfloat16)                        # (hid, B*N)
    v_all = qkv[2 * hid:].astype(jnp.bfloat16)                           # (hid, B*N)

    # B and heads are small static ints -> unrolled loops, static slices.
    out_cols = []
    for b in range(B):
        head_rows = []
        for h in range(heads):
            lo = h * dim_head
            qh = q_t[b * N:(b + 1) * N, lo:lo + dim_head]                # (N, Dh)  bf16
            kh = k_all[lo:lo + dim_head, b * N:(b + 1) * N]              # (Dh, N)  bf16
            vh = v_all[lo:lo + dim_head, b * N:(b + 1) * N]              # (Dh, N)  bf16

            # sim[i, j] = scale * sum_d q[i, d] * k[d, j]   (canonical matmul)
            sim = jax.lax.dot_general(
                qh, kh, (((1,), (0,)), ((), ())),
                preferred_element_type=jnp.float32) * scale              # (N, N) f32

            # Numerically stable softmax over j; divide -> EUP reciprocal.
            sim = sim - jnp.max(sim, axis=-1, keepdims=True)
            p = jnp.exp(sim)
            attn = p * pl.reciprocal(jnp.sum(p, axis=-1, keepdims=True),
                                     approx=True)                        # (N, N) f32

            # out[d, i] = sum_j v[d, j] * attn[i, j]   (trans_b matmul, no k.T)
            oh = jax.lax.dot_general(
                vh, attn.astype(jnp.bfloat16), (((1,), (1,)), ((), ())),
                preferred_element_type=jnp.float32)                      # (Dh, N) f32
            head_rows.append(oh)
        # 'b h n d -> b (h d) n' rearrange == stacking heads along sublanes.
        out_cols.append(jnp.concatenate(head_rows, axis=0))              # (hid, N)

    out_slab = jnp.concatenate(out_cols, axis=1).astype(jnp.bfloat16)    # (hid, B*N)

    # Output projection as ONE K=hid matmul for the whole batch, plus bias.
    y = jax.lax.dot_general(
        wout_ref[...], out_slab, (((1,), (0,)), ((), ())),
        preferred_element_type=jnp.float32)                              # (dim_out, B*N)
    y = y + bout_ref[...]                                                # lane-broadcast bias

    for b in range(B):
        o_ref[b] = y[:, b * N:(b + 1) * N].astype(o_ref.dtype)


def attention_forward(x, w_qkv, w_out, b_out, *, heads=4, dim_head=32):
    """Pallas port of Attention.forward.

    x:     (B, C, N)
    w_qkv: (3*heads*dim_head, C)     = to_qkv.weight[:, :, 0]
    w_out: (dim_out, heads*dim_head) = to_out.weight[:, :, 0]
    b_out: (dim_out,)                = to_out.bias
    returns (B, dim_out, N)
    """
    B, C, N = x.shape
    hid = heads * dim_head
    assert w_qkv.shape == (3 * hid, C)
    dim_out = w_out.shape[0]
    assert w_out.shape == (dim_out, hid)
    assert b_out.shape == (dim_out,)
    scale = dim_head ** -0.5

    # bf16 MXU operands (native layouts, no transposes); f32 bias/accum.
    x_bf = x.astype(jnp.bfloat16)
    wqkv_bf = w_qkv.astype(jnp.bfloat16)
    wout_bf = w_out.astype(jnp.bfloat16)
    bout = b_out.reshape(dim_out, 1).astype(jnp.float32)

    flops = (2 * B * N * C * (3 * hid)                     # qkv projection
             + 2 * 2 * B * heads * N * N * dim_head        # sim + attn @ v
             + 2 * B * N * hid * dim_out)                  # output projection
    transcendentals = B * heads * N * N + B * heads * N    # exp + reciprocal
    bytes_accessed = (B * C * N * 2 + 3 * hid * C * 2 + dim_out * hid * 2
                      + dim_out * 4 + B * dim_out * N * 4)

    kernel = functools.partial(_attention_kernel, heads=heads,
                               dim_head=dim_head, scale=scale)

    y = pl.pallas_call(
        kernel,
        out_shape=jax.ShapeDtypeStruct((B, dim_out, N), jnp.float32),
        grid=(1,),                                          # single fat step
        in_specs=[
            pl.BlockSpec((B, C, N), lambda i: (0, 0, 0)),
            pl.BlockSpec((3 * hid, C), lambda i: (0, 0)),
            pl.BlockSpec((dim_out, hid), lambda i: (0, 0)),
            pl.BlockSpec((dim_out, 1), lambda i: (0, 0)),
        ],
        out_specs=pl.BlockSpec((B, dim_out, N), lambda i: (0, 0, 0)),
        compiler_params=pltpu.CompilerParams(
            dimension_semantics=("arbitrary",)),
        cost_estimate=pl.CostEstimate(flops=flops,
                                      transcendentals=transcendentals,
                                      bytes_accessed=bytes_accessed),
    )(x_bf, wqkv_bf, wout_bf, bout)

    return y


def _reference_np(x, w_qkv, w_out, b_out, heads, dim_head):
    """float64 numpy reference mirroring the PyTorch module exactly."""
    x = np.asarray(x, np.float64)
    w_qkv = np.asarray(w_qkv, np.float64)
    w_out = np.asarray(w_out, np.float64)
    b_out = np.asarray(b_out, np.float64)
    B, C, N = x.shape
    hid = heads * dim_head
    scale = dim_head ** -0.5

    qkv = np.einsum('oc,bcn->bon', w_qkv, x)                       # (B, 3*hid, N)
    q, k, v = np.split(qkv, 3, axis=1)
    q = q.reshape(B, heads, dim_head, N) * scale
    k = k.reshape(B, heads, dim_head, N)
    v = v.reshape(B, heads, dim_head, N)
    sim = np.einsum('bhdi,bhdj->bhij', q, k)                       # (B, h, N, N)
    sim = sim - sim.max(-1, keepdims=True)
    attn = np.exp(sim)
    attn = attn / attn.sum(-1, keepdims=True)
    out = np.einsum('bhij,bhdj->bhid', attn, v)                    # (B, h, N, Dh)
    out = out.transpose(0, 1, 3, 2).reshape(B, hid, N)             # 'b h n d -> b (h d) n'
    y = np.einsum('oc,bcn->bon', w_out, out) + b_out[None, :, None]
    return y


if __name__ == "__main__":
    # Module config: dim=32, heads=4, dim_head=32 -> hidden=128. Small shapes.
    dim = 32
    heads = 4
    dim_head = 32
    hid = heads * dim_head
    B, N = 2, 16

    key = jax.random.PRNGKey(0)
    kx, kq, kw, kb = jax.random.split(key, 4)
    x = jax.random.normal(kx, (B, dim, N), dtype=jnp.float32)
    w_qkv = 0.1 * jax.random.normal(kq, (3 * hid, dim), dtype=jnp.float32)
    w_out = 0.1 * jax.random.normal(kw, (dim, hid), dtype=jnp.float32)
    b_out = 0.1 * jax.random.normal(kb, (dim,), dtype=jnp.float32)

    y = attention_forward(x, w_qkv, w_out, b_out, heads=heads, dim_head=dim_head)
    y = jax.block_until_ready(y)

    ref = _reference_np(x, w_qkv, w_out, b_out, heads, dim_head)
    assert y.shape == (B, dim, N), y.shape
    # Tolerance accounts for bf16 MXU operands + approximate EUP reciprocal
    # (observed error is O(1e-3) at these magnitudes; accumulation is f32).
    err = float(np.max(np.abs(np.asarray(y, np.float64) - ref)))
    assert np.allclose(np.asarray(y, np.float64), ref, atol=2e-2, rtol=2e-2), (
        "mismatch vs reference: max abs err = %g" % err)

    print("KERNEL_OK")
</pallas_src>

<mosaic_0001>
module attributes {stable_mosaic.version = 11 : i64} {
  func.func @_attention_kernel(%arg0: i32, %arg1: memref<2x32x16xbf16, #tpu.memory_space<vmem>>, %arg2: memref<384x32xbf16, #tpu.memory_space<vmem>>, %arg3: memref<32x128xbf16, #tpu.memory_space<vmem>>, %arg4: memref<32x1xf32, #tpu.memory_space<vmem>>, %arg5: memref<2x32x16xf32, #tpu.memory_space<vmem>>) attributes {dimension_semantics = [#tpu.dimension_semantics<arbitrary>], iteration_bounds = array<i64: 1>, scalar_prefetch = 0 : i64, scratch_operands = 0 : i64, tpu.core_type = #tpu.core_type<tc>, window_params = [{pipeline_mode = #tpu.pipeline_mode<synchronous>, transform_indices = @transform_0, window_bounds = array<i64: 2, 32, 16>}, {pipeline_mode = #tpu.pipeline_mode<synchronous>, transform_indices = @transform_1, window_bounds = array<i64: 384, 32>}, {pipeline_mode = #tpu.pipeline_mode<synchronous>, transform_indices = @transform_2, window_bounds = array<i64: 32, 128>}, {pipeline_mode = #tpu.pipeline_mode<synchronous>, transform_indices = @transform_3, window_bounds = array<i64: 32, 1>}, {pipeline_mode = #tpu.pipeline_mode<synchronous>, transform_indices = @transform_4, window_bounds = array<i64: 2, 32, 16>}]} {
    %c0 = arith.constant 0 : index
    %c0_0 = arith.constant 0 : index
    %c0_1 = arith.constant 0 : index
    %0 = vector.load %arg1[%c0, %c0_0, %c0_1] : memref<2x32x16xbf16, #tpu.memory_space<vmem>>, vector<1x32x16xbf16>
    %1 = vector.shape_cast %0 : vector<1x32x16xbf16> to vector<32x16xbf16>
    %c1 = arith.constant 1 : index
    %c0_2 = arith.constant 0 : index
    %c0_3 = arith.constant 0 : index
    %2 = vector.load %arg1[%c1, %c0_2, %c0_3] : memref<2x32x16xbf16, #tpu.memory_space<vmem>>, vector<1x32x16xbf16>
    %3 = vector.shape_cast %2 : vector<1x32x16xbf16> to vector<32x16xbf16>
    %4 = tpu.concatenate %1, %3 in 1 : vector<32x16xbf16>, vector<32x16xbf16> -> vector<32x32xbf16>
    %c0_4 = arith.constant 0 : index
    %c0_5 = arith.constant 0 : index
    %5 = vector.load %arg2[%c0_4, %c0_5] : memref<384x32xbf16, #tpu.memory_space<vmem>>, vector<384x32xbf16>
    %cst = arith.constant dense<0.000000e+00> : vector<384x32xf32>
    %6 = tpu.matmul %5, %4, %cst {dimension_numbers = #tpu.dot_dimension_numbers<[1], [0], [0], [1], [0, 0, 1, 1], [], []>} : vector<384x32xbf16>, vector<32x32xbf16>, vector<384x32xf32> -> vector<384x32xf32>
    %7 = vector.extract_strided_slice %6 {offsets = [0, 0], sizes = [128, 32], strides = [1, 1]} : vector<384x32xf32> to vector<128x32xf32>
    %8 = tpu.transpose %7, [1, 0] : vector<128x32xf32> -> vector<32x128xf32>
    %9 = arith.truncf %8 : vector<32x128xf32> to vector<32x128xbf16>
    %10 = vector.extract_strided_slice %6 {offsets = [128, 0], sizes = [128, 32], strides = [1, 1]} : vector<384x32xf32> to vector<128x32xf32>
    %11 = arith.truncf %10 : vector<128x32xf32> to vector<128x32xbf16>
    %12 = vector.extract_strided_slice %6 {offsets = [256, 0], sizes = [128, 32], strides = [1, 1]} : vector<384x32xf32> to vector<128x32xf32>
    %13 = arith.truncf %12 : vector<128x32xf32> to vector<128x32xbf16>
    %14 = vector.extract_strided_slice %9 {offsets = [0, 0], sizes = [16, 32], strides = [1, 1]} : vector<32x128xbf16> to vector<16x32xbf16>
    %15 = vector.extract_strided_slice %11 {offsets = [0, 0], sizes = [32, 16], strides = [1, 1]} : vector<128x32xbf16> to vector<32x16xbf16>
    %16 = vector.extract_strided_slice %13 {offsets = [0, 0], sizes = [32, 16], strides = [1, 1]} : vector<128x32xbf16> to vector<32x16xbf16>
    %cst_6 = arith.constant dense<0.000000e+00> : vector<16x16xf32>
    %17 = tpu.matmul %14, %15, %cst_6 {dimension_numbers = #tpu.dot_dimension_numbers<[1], [0], [0], [1], [0, 0, 1, 1], [], []>} : vector<16x32xbf16>, vector<32x16xbf16>, vector<16x16xf32> -> vector<16x16xf32>
    %cst_7 = arith.constant 0.176776692 : f32
    %18 = vector.broadcast %cst_7 : f32 to vector<16x16xf32>
    %19 = arith.mulf %17, %18 : vector<16x16xf32>
    %cst_8 = arith.constant dense<0xFF800000> : vector<16xf32>
    %20 = vector.multi_reduction <maximumf>, %19, %cst_8 [1] : vector<16x16xf32> to vector<16xf32>
    %21 = vector.shape_cast %20 : vector<16xf32> to vector<16x1xf32>
    %22 = vector.broadcast %21 : vector<16x1xf32> to vector<16x16xf32>
    %23 = arith.subf %19, %22 : vector<16x16xf32>
    %24 = math.exp %23 : vector<16x16xf32>
    %cst_9 = arith.constant dense<0.000000e+00> : vector<16xf32>
    %25 = vector.multi_reduction <add>, %24, %cst_9 [1] : vector<16x16xf32> to vector<16xf32>
    %26 = vector.shape_cast %25 : vector<16xf32> to vector<16x1xf32>
    %27 = tpu.reciprocal %26 {approx = true} : vector<16x1xf32> -> vector<16x1xf32>
    %28 = vector.broadcast %27 : vector<16x1xf32> to vector<16x16xf32>
    %29 = arith.mulf %24, %28 : vector<16x16xf32>
    %30 = arith.truncf %29 : vector<16x16xf32> to vector<16x16xbf16>
    %cst_10 = arith.constant dense<0.000000e+00> : vector<32x16xf32>
    %31 = tpu.matmul %16, %30, %cst_10 {dimension_numbers = #tpu.dot_dimension_numbers<[1], [1], [0], [0], [0, 0, 1, 0], [], []>} : vector<32x16xbf16>, vector<16x16xbf16>, vector<32x16xf32> -> vector<32x16xf32>
    %32 = vector.extract_strided_slice %9 {offsets = [0, 32], sizes = [16, 32], strides = [1, 1]} : vector<32x128xbf16> to vector<16x32xbf16>
    %33 = vector.extract_strided_slice %11 {offsets = [32, 0], sizes = [32, 16], strides = [1, 1]} : vector<128x32xbf16> to vector<32x16xbf16>
    %34 = vector.extract_strided_slice %13 {offsets = [32, 0], sizes = [32, 16], strides = [1, 1]} : vector<128x32xbf16> to vector<32x16xbf16>
    %cst_11 = arith.constant dense<0.000000e+00> : vector<16x16xf32>
    %35 = tpu.matmul %32, %33, %cst_11 {dimension_numbers = #tpu.dot_dimension_numbers<[1], [0], [0], [1], [0, 0, 1, 1], [], []>} : vector<16x32xbf16>, vector<32x16xbf16>, vector<16x16xf32> -> vector<16x16xf32>
    %cst_12 = arith.constant 0.176776692 : f32
    %36 = vector.broadcast %cst_12 : f32 to vector<16x16xf32>
    %37 = arith.mulf %35, %36 : vector<16x16xf32>
    %cst_13 = arith.constant dense<0xFF800000> : vector<16xf32>
    %38 = vector.multi_reduction <maximumf>, %37, %cst_13 [1] : vector<16x16xf32> to vector<16xf32>
    %39 = vector.shape_cast %38 : vector<16xf32> to vector<16x1xf32>
    %40 = vector.broadcast %39 : vector<16x1xf32> to vector<16x16xf32>
    %41 = arith.subf %37, %40 : vector<16x16xf32>
    %42 = math.exp %41 : vector<16x16xf32>
    %cst_14 = arith.constant dense<0.000000e+00> : vector<16xf32>
    %43 = vector.multi_reduction <add>, %42, %cst_14 [1] : vector<16x16xf32> to vector<16xf32>
    %44 = vector.shape_cast %43 : vector<16xf32> to vector<16x1xf32>
    %45 = tpu.reciprocal %44 {approx = true} : vector<16x1xf32> -> vector<16x1xf32>
    %46 = vector.broadcast %45 : vector<16x1xf32> to vector<16x16xf32>
    %47 = arith.mulf %42, %46 : vector<16x16xf32>
    %48 = arith.truncf %47 : vector<16x16xf32> to vector<16x16xbf16>
    %cst_15 = arith.constant dense<0.000000e+00> : vector<32x16xf32>
    %49 = tpu.matmul %34, %48, %cst_15 {dimension_numbers = #tpu.dot_dimension_numbers<[1], [1], [0], [0], [0, 0, 1, 0], [], []>} : vector<32x16xbf16>, vector<16x16xbf16>, vector<32x16xf32> -> vector<32x16xf32>
    %50 = vector.extract_strided_slice %9 {offsets = [0, 64], sizes = [16, 32], strides = [1, 1]} : vector<32x128xbf16> to vector<16x32xbf16>
    %51 = vector.extract_strided_slice %11 {offsets = [64, 0], sizes = [32, 16], strides = [1, 1]} : vector<128x32xbf16> to vector<32x16xbf16>
    %52 = vector.extract_strided_slice %13 {offsets = [64, 0], sizes = [32, 16], strides = [1, 1]} : vector<128x32xbf16> to vector<32x16xbf16>
    %cst_16 = arith.constant dense<0.000000e+00> : vector<16x16xf32>
    %53 = tpu.matmul %50, %51, %cst_16 {dimension_numbers = #tpu.dot_dimension_numbers<[1], [0], [0], [1], [0, 0, 1, 1], [], []>} : vector<16x32xbf16>, vector<32x16xbf16>, vector<16x16xf32> -> vector<16x16xf32>
    %cst_17 = arith.constant 0.176776692 : f32
    %54 = vector.broadcast %cst_17 : f32 to vector<16x16xf32>
    %55 = arith.mulf %53, %54 : vector<16x16xf32>
    %cst_18 = arith.constant dense<0xFF800000> : vector<16xf32>
    %56 = vector.multi_reduction <maximumf>, %55, %cst_18 [1] : vector<16x16xf32> to vector<16xf32>
    %57 = vector.shape_cast %56 : vector<16xf32> to vector<16x1xf32>
    %58 = vector.broadcast %57 : vector<16x1xf32> to vector<16x16xf32>
    %59 = arith.subf %55, %58 : vector<16x16xf32>
    %60 = math.exp %59 : vector<16x16xf32>
    %cst_19 = arith.constant dense<0.000000e+00> : vector<16xf32>
    %61 = vector.multi_reduction <add>, %60, %cst_19 [1] : vector<16x16xf32> to vector<16xf32>
    %62 = vector.shape_cast %61 : vector<16xf32> to vector<16x1xf32>
    %63 = tpu.reciprocal %62 {approx = true} : vector<16x1xf32> -> vector<16x1xf32>
    %64 = vector.broadcast %63 : vector<16x1xf32> to vector<16x16xf32>
    %65 = arith.mulf %60, %64 : vector<16x16xf32>
    %66 = arith.truncf %65 : vector<16x16xf32> to vector<16x16xbf16>
    %cst_20 = arith.constant dense<0.000000e+00> : vector<32x16xf32>
    %67 = tpu.matmul %52, %66, %cst_20 {dimension_numbers = #tpu.dot_dimension_numbers<[1], [1], [0], [0], [0, 0, 1, 0], [], []>} : vector<32x16xbf16>, vector<16x16xbf16>, vector<32x16xf32> -> vector<32x16xf32>
    %68 = vector.extract_strided_slice %9 {offsets = [0, 96], sizes = [16, 32], strides = [1, 1]} : vector<32x128xbf16> to vector<16x32xbf16>
    %69 = vector.extract_strided_slice %11 {offsets = [96, 0], sizes = [32, 16], strides = [1, 1]} : vector<128x32xbf16> to vector<32x16xbf16>
    %70 = vector.extract_strided_slice %13 {offsets = [96, 0], sizes = [32, 16], strides = [1, 1]} : vector<128x32xbf16> to vector<32x16xbf16>
    %cst_21 = arith.constant dense<0.000000e+00> : vector<16x16xf32>
    %71 = tpu.matmul %68, %69, %cst_21 {dimension_numbers = #tpu.dot_dimension_numbers<[1], [0], [0], [1], [0, 0, 1, 1], [], []>} : vector<16x32xbf16>, vector<32x16xbf16>, vector<16x16xf32> -> vector<16x16xf32>
    %cst_22 = arith.constant 0.176776692 : f32
    %72 = vector.broadcast %cst_22 : f32 to vector<16x16xf32>
    %73 = arith.mulf %71, %72 : vector<16x16xf32>
    %cst_23 = arith.constant dense<0xFF800000> : vector<16xf32>
    %74 = vector.multi_reduction <maximumf>, %73, %cst_23 [1] : vector<16x16xf32> to vector<16xf32>
    %75 = vector.shape_cast %74 : vector<16xf32> to vector<16x1xf32>
    %76 = vector.broadcast %75 : vector<16x1xf32> to vector<16x16xf32>
    %77 = arith.subf %73, %76 : vector<16x16xf32>
    %78 = math.exp %77 : vector<16x16xf32>
    %cst_24 = arith.constant dense<0.000000e+00> : vector<16xf32>
    %79 = vector.multi_reduction <add>, %78, %cst_24 [1] : vector<16x16xf32> to vector<16xf32>
    %80 = vector.shape_cast %79 : vector<16xf32> to vector<16x1xf32>
    %81 = tpu.reciprocal %80 {approx = true} : vector<16x1xf32> -> vector<16x1xf32>
    %82 = vector.broadcast %81 : vector<16x1xf32> to vector<16x16xf32>
    %83 = arith.mulf %78, %82 : vector<16x16xf32>
    %84 = arith.truncf %83 : vector<16x16xf32> to vector<16x16xbf16>
    %cst_25 = arith.constant dense<0.000000e+00> : vector<32x16xf32>
    %85 = tpu.matmul %70, %84, %cst_25 {dimension_numbers = #tpu.dot_dimension_numbers<[1], [1], [0], [0], [0, 0, 1, 0], [], []>} : vector<32x16xbf16>, vector<16x16xbf16>, vector<32x16xf32> -> vector<32x16xf32>
    %86 = tpu.concatenate %31, %49, %67, %85 in 0 : vector<32x16xf32>, vector<32x16xf32>, vector<32x16xf32>, vector<32x16xf32> -> vector<128x16xf32>
    %87 = vector.extract_strided_slice %9 {offsets = [16, 0], sizes = [16, 32], strides = [1, 1]} : vector<32x128xbf16> to vector<16x32xbf16>
    %88 = vector.extract_strided_slice %11 {offsets = [0, 16], sizes = [32, 16], strides = [1, 1]} : vector<128x32xbf16> to vector<32x16xbf16>
    %89 = vector.extract_strided_slice %13 {offsets = [0, 16], sizes = [32, 16], strides = [1, 1]} : vector<128x32xbf16> to vector<32x16xbf16>
    %cst_26 = arith.constant dense<0.000000e+00> : vector<16x16xf32>
    %90 = tpu.matmul %87, %88, %cst_26 {dimension_numbers = #tpu.dot_dimension_numbers<[1], [0], [0], [1], [0, 0, 1, 1], [], []>} : vector<16x32xbf16>, vector<32x16xbf16>, vector<16x16xf32> -> vector<16x16xf32>
    %cst_27 = arith.constant 0.176776692 : f32
    %91 = vector.broadcast %cst_27 : f32 to vector<16x16xf32>
    %92 = arith.mulf %90, %91 : vector<16x16xf32>
    %cst_28 = arith.constant dense<0xFF800000> : vector<16xf32>
    %93 = vector.multi_reduction <maximumf>, %92, %cst_28 [1] : vector<16x16xf32> to vector<16xf32>
    %94 = vector.shape_cast %93 : vector<16xf32> to vector<16x1xf32>
    %95 = vector.broadcast %94 : vector<16x1xf32> to vector<16x16xf32>
    %96 = arith.subf %92, %95 : vector<16x16xf32>
    %97 = math.exp %96 : vector<16x16xf32>
    %cst_29 = arith.constant dense<0.000000e+00> : vector<16xf32>
    %98 = vector.multi_reduction <add>, %97, %cst_29 [1] : vector<16x16xf32> to vector<16xf32>
    %99 = vector.shape_cast %98 : vector<16xf32> to vector<16x1xf32>
    %100 = tpu.reciprocal %99 {approx = true} : vector<16x1xf32> -> vector<16x1xf32>
    %101 = vector.broadcast %100 : vector<16x1xf32> to vector<16x16xf32>
    %102 = arith.mulf %97, %101 : vector<16x16xf32>
    %103 = arith.truncf %102 : vector<16x16xf32> to vector<16x16xbf16>
    %cst_30 = arith.constant dense<0.000000e+00> : vector<32x16xf32>
    %104 = tpu.matmul %89, %103, %cst_30 {dimension_numbers = #tpu.dot_dimension_numbers<[1], [1], [0], [0], [0, 0, 1, 0], [], []>} : vector<32x16xbf16>, vector<16x16xbf16>, vector<32x16xf32> -> vector<32x16xf32>
    %105 = vector.extract_strided_slice %9 {offsets = [16, 32], sizes = [16, 32], strides = [1, 1]} : vector<32x128xbf16> to vector<16x32xbf16>
    %106 = vector.extract_strided_slice %11 {offsets = [32, 16], sizes = [32, 16], strides = [1, 1]} : vector<128x32xbf16> to vector<32x16xbf16>
    %107 = vector.extract_strided_slice %13 {offsets = [32, 16], sizes = [32, 16], strides = [1, 1]} : vector<128x32xbf16> to vector<32x16xbf16>
    %cst_31 = arith.constant dense<0.000000e+00> : vector<16x16xf32>
    %108 = tpu.matmul %105, %106, %cst_31 {dimension_numbers = #tpu.dot_dimension_numbers<[1], [0], [0], [1], [0, 0, 1, 1], [], []>} : vector<16x32xbf16>, vector<32x16xbf16>, vector<16x16xf32> -> vector<16x16xf32>
    %cst_32 = arith.constant 0.176776692 : f32
    %109 = vector.broadcast %cst_32 : f32 to vector<16x16xf32>
    %110 = arith.mulf %108, %109 : vector<16x16xf32>
    %cst_33 = arith.constant dense<0xFF800000> : vector<16xf32>
    %111 = vector.multi_reduction <maximumf>, %110, %cst_33 [1] : vector<16x16xf32> to vector<16xf32>
    %112 = vector.shape_cast %111 : vector<16xf32> to vector<16x1xf32>
    %113 = vector.broadcast %112 : vector<16x1xf32> to vector<16x16xf32>
    %114 = arith.subf %110, %113 : vector<16x16xf32>
    %115 = math.exp %114 : vector<16x16xf32>
    %cst_34 = arith.constant dense<0.000000e+00> : vector<16xf32>
    %116 = vector.multi_reduction <add>, %115, %cst_34 [1] : vector<16x16xf32> to vector<16xf32>
    %117 = vector.shape_cast %116 : vector<16xf32> to vector<16x1xf32>
    %118 = tpu.reciprocal %117 {approx = true} : vector<16x1xf32> -> vector<16x1xf32>
    %119 = vector.broadcast %118 : vector<16x1xf32> to vector<16x16xf32>
    %120 = arith.mulf %115, %119 : vector<16x16xf32>
    %121 = arith.truncf %120 : vector<16x16xf32> to vector<16x16xbf16>
    %cst_35 = arith.constant dense<0.000000e+00> : vector<32x16xf32>
    %122 = tpu.matmul %107, %121, %cst_35 {dimension_numbers = #tpu.dot_dimension_numbers<[1], [1], [0], [0], [0, 0, 1, 0], [], []>} : vector<32x16xbf16>, vector<16x16xbf16>, vector<32x16xf32> -> vector<32x16xf32>
    %123 = vector.extract_strided_slice %9 {offsets = [16, 64], sizes = [16, 32], strides = [1, 1]} : vector<32x128xbf16> to vector<16x32xbf16>
    %124 = vector.extract_strided_slice %11 {offsets = [64, 16], sizes = [32, 16], strides = [1, 1]} : vector<128x32xbf16> to vector<32x16xbf16>
    %125 = vector.extract_strided_slice %13 {offsets = [64, 16], sizes = [32, 16], strides = [1, 1]} : vector<128x32xbf16> to vector<32x16xbf16>
    %cst_36 = arith.constant dense<0.000000e+00> : vector<16x16xf32>
    %126 = tpu.matmul %123, %124, %cst_36 {dimension_numbers = #tpu.dot_dimension_numbers<[1], [0], [0], [1], [0, 0, 1, 1], [], []>} : vector<16x32xbf16>, vector<32x16xbf16>, vector<16x16xf32> -> vector<16x16xf32>
    %cst_37 = arith.constant 0.176776692 : f32
    %127 = vector.broadcast %cst_37 : f32 to vector<16x16xf32>
    %128 = arith.mulf %126, %127 : vector<16x16xf32>
    %cst_38 = arith.constant dense<0xFF800000> : vector<16xf32>
    %129 = vector.multi_reduction <maximumf>, %128, %cst_38 [1] : vector<16x16xf32> to vector<16xf32>
    %130 = vector.shape_cast %129 : vector<16xf32> to vector<16x1xf32>
    %131 = vector.broadcast %130 : vector<16x1xf32> to vector<16x16xf32>
    %132 = arith.subf %128, %131 : vector<16x16xf32>
    %133 = math.exp %132 : vector<16x16xf32>
    %cst_39 = arith.constant dense<0.000000e+00> : vector<16xf32>
    %134 = vector.multi_reduction <add>, %133, %cst_39 [1] : vector<16x16xf32> to vector<16xf32>
    %135 = vector.shape_cast %134 : vector<16xf32> to vector<16x1xf32>
    %136 = tpu.reciprocal %135 {approx = true} : vector<16x1xf32> -> vector<16x1xf32>
    %137 = vector.broadcast %136 : vector<16x1xf32> to vector<16x16xf32>
    %138 = arith.mulf %133, %137 : vector<16x16xf32>
    %139 = arith.truncf %138 : vector<16x16xf32> to vector<16x16xbf16>
    %cst_40 = arith.constant dense<0.000000e+00> : vector<32x16xf32>
    %140 = tpu.matmul %125, %139, %cst_40 {dimension_numbers = #tpu.dot_dimension_numbers<[1], [1], [0], [0], [0, 0, 1, 0], [], []>} : vector<32x16xbf16>, vector<16x16xbf16>, vector<32x16xf32> -> vector<32x16xf32>
    %141 = vector.extract_strided_slice %9 {offsets = [16, 96], sizes = [16, 32], strides = [1, 1]} : vector<32x128xbf16> to vector<16x32xbf16>
    %142 = vector.extract_strided_slice %11 {offsets = [96, 16], sizes = [32, 16], strides = [1, 1]} : vector<128x32xbf16> to vector<32x16xbf16>
    %143 = vector.extract_strided_slice %13 {offsets = [96, 16], sizes = [32, 16], strides = [1, 1]} : vector<128x32xbf16> to vector<32x16xbf16>
    %cst_41 = arith.constant dense<0.000000e+00> : vector<16x16xf32>
    %144 = tpu.matmul %141, %142, %cst_41 {dimension_numbers = #tpu.dot_dimension_numbers<[1], [0], [0], [1], [0, 0, 1, 1], [], []>} : vector<16x32xbf16>, vector<32x16xbf16>, vector<16x16xf32> -> vector<16x16xf32>
    %cst_42 = arith.constant 0.176776692 : f32
    %145 = vector.broadcast %cst_42 : f32 to vector<16x16xf32>
    %146 = arith.mulf %144, %145 : vector<16x16xf32>
    %cst_43 = arith.constant dense<0xFF800000> : vector<16xf32>
    %147 = vector.multi_reduction <maximumf>, %146, %cst_43 [1] : vector<16x16xf32> to vector<16xf32>
    %148 = vector.shape_cast %147 : vector<16xf32> to vector<16x1xf32>
    %149 = vector.broadcast %148 : vector<16x1xf32> to vector<16x16xf32>
    %150 = arith.subf %146, %149 : vector<16x16xf32>
    %151 = math.exp %150 : vector<16x16xf32>
    %cst_44 = arith.constant dense<0.000000e+00> : vector<16xf32>
    %152 = vector.multi_reduction <add>, %151, %cst_44 [1] : vector<16x16xf32> to vector<16xf32>
    %153 = vector.shape_cast %152 : vector<16xf32> to vector<16x1xf32>
    %154 = tpu.reciprocal %153 {approx = true} : vector<16x1xf32> -> vector<16x1xf32>
    %155 = vector.broadcast %154 : vector<16x1xf32> to vector<16x16xf32>
    %156 = arith.mulf %151, %155 : vector<16x16xf32>
    %157 = arith.truncf %156 : vector<16x16xf32> to vector<16x16xbf16>
    %cst_45 = arith.constant dense<0.000000e+00> : vector<32x16xf32>
    %158 = tpu.matmul %143, %157, %cst_45 {dimension_numbers = #tpu.dot_dimension_numbers<[1], [1], [0], [0], [0, 0, 1, 0], [], []>} : vector<32x16xbf16>, vector<16x16xbf16>, vector<32x16xf32> -> vector<32x16xf32>
    %159 = tpu.concatenate %104, %122, %140, %158 in 0 : vector<32x16xf32>, vector<32x16xf32>, vector<32x16xf32>, vector<32x16xf32> -> vector<128x16xf32>
    %160 = tpu.concatenate %86, %159 in 1 : vector<128x16xf32>, vector<128x16xf32> -> vector<128x32xf32>
    %161 = arith.truncf %160 : vector<128x32xf32> to vector<128x32xbf16>
    %c0_46 = arith.constant 0 : index
    %c0_47 = arith.constant 0 : index
    %162 = vector.load %arg3[%c0_46, %c0_47] : memref<32x128xbf16, #tpu.memory_space<vmem>>, vector<32x128xbf16>
    %cst_48 = arith.constant dense<0.000000e+00> : vector<32x32xf32>
    %163 = tpu.matmul %162, %161, %cst_48 {dimension_numbers = #tpu.dot_dimension_numbers<[1], [0], [0], [1], [0, 0, 1, 1], [], []>} : vector<32x128xbf16>, vector<128x32xbf16>, vector<32x32xf32> -> vector<32x32xf32>
    %c0_49 = arith.constant 0 : index
    %c0_50 = arith.constant 0 : index
    %164 = vector.load %arg4[%c0_49, %c0_50] : memref<32x1xf32, #tpu.memory_space<vmem>>, vector<32x1xf32>
    %165 = vector.broadcast %164 : vector<32x1xf32> to vector<32x32xf32>
    %166 = arith.addf %163, %165 : vector<32x32xf32>
    %167 = vector.extract_strided_slice %166 {offsets = [0, 0], sizes = [32, 16], strides = [1, 1]} : vector<32x32xf32> to vector<32x16xf32>
    %c0_51 = arith.constant 0 : index
    %c0_52 = arith.constant 0 : index
    %c0_53 = arith.constant 0 : index
    %168 = vector.load %arg5[%c0_51, %c0_52, %c0_53] : memref<2x32x16xf32, #tpu.memory_space<vmem>>, vector<1x32x16xf32>
    %169 = vector.shape_cast %168 : vector<1x32x16xf32> to vector<32x16xf32>
    %170 = vector.shape_cast %167 : vector<32x16xf32> to vector<1x32x16xf32>
    tpu.vector_store %arg5[%c0_51, %c0_52, %c0_53], %170 {strides = array<i32>} : memref<2x32x16xf32, #tpu.memory_space<vmem>>, vector<1x32x16xf32>,
    %171 = vector.extract_strided_slice %166 {offsets = [0, 16], sizes = [32, 16], strides = [1, 1]} : vector<32x32xf32> to vector<32x16xf32>
    %c1_54 = arith.constant 1 : index
    %c0_55 = arith.constant 0 : index
    %c0_56 = arith.constant 0 : index
    %172 = vector.load %arg5[%c1_54, %c0_55, %c0_56] : memref<2x32x16xf32, #tpu.memory_space<vmem>>, vector<1x32x16xf32>
    %173 = vector.shape_cast %172 : vector<1x32x16xf32> to vector<32x16xf32>
    %174 = vector.shape_cast %171 : vector<32x16xf32> to vector<1x32x16xf32>
    tpu.vector_store %arg5[%c1_54, %c0_55, %c0_56], %174 {strides = array<i32>} : memref<2x32x16xf32, #tpu.memory_space<vmem>>, vector<1x32x16xf32>,
    return
  }
  func.func @transform_0(%arg0: i32) -> (i32, i32, i32) {
    %c0_i32 = arith.constant 0 : i32
    %c0_i32_0 = arith.constant 0 : i32
    %c0_i32_1 = arith.constant 0 : i32
    %c0_i32_2 = arith.constant 0 : i32
    return %c0_i32, %c0_i32_0, %c0_i32_1 : i32, i32, i32
  }
  func.func @transform_1(%arg0: i32) -> (i32, i32) {
    %c0_i32 = arith.constant 0 : i32
    %c0_i32_0 = arith.constant 0 : i32
    %c0_i32_1 = arith.constant 0 : i32
    return %c0_i32, %c0_i32_0 : i32, i32
  }
  func.func @transform_2(%arg0: i32) -> (i32, i32) {
    %c0_i32 = arith.constant 0 : i32
    %c0_i32_0 = arith.constant 0 : i32
    %c0_i32_1 = arith.constant 0 : i32
    return %c0_i32, %c0_i32_0 : i32, i32
  }
  func.func @transform_3(%arg0: i32) -> (i32, i32) {
    %c0_i32 = arith.constant 0 : i32
    %c0_i32_0 = arith.constant 0 : i32
    %c0_i32_1 = arith.constant 0 : i32
    return %c0_i32, %c0_i32_0 : i32, i32
  }
  func.func @transform_4(%arg0: i32) -> (i32, i32, i32) {
    %c0_i32 = arith.constant 0 : i32
    %c0_i32_0 = arith.constant 0 : i32
    %c0_i32_1 = arith.constant 0 : i32
    %c0_i32_2 = arith.constant 0 : i32
    return %c0_i32, %c0_i32_0, %c0_i32_1 : i32, i32, i32
  }
}

</mosaic_0001>

<bundles_post_ra>
// kernel: tpu_custom_call.1
= control target key start
LH: loop header
LB: loop body
LE: loop exit
PB: predicated region body
PF: predicated region fallthrough
CT: control target
= control target key end

     0   :  { %s2378_s17 = smov 16   ;;  %vm228_vm0 = vcmask 261120   ;;  %vm51_vm1 = vcmask 130048   ;;  %v2379_v21 = vmov 0.0   ;;  %vm2380_vm2 = vmmov 0   ;;  %s2381_s15 = smov 96   ;;  %s2875_s0 = inlined_call_operand.vmem [shape: bf16[2,32,16], index: 0, kind: input, shape index: {}]   ;;  %s2876_s1 = inlined_call_operand.vmem [shape: bf16[384,32], index: 1, kind: input, shape index: {}]   ;;  %s2877_s2 = inlined_call_operand.vmem [shape: bf16[32,128], index: 2, kind: input, shape index: {}]   ;;  %s2878_s3 = inlined_call_operand.vmem [shape: f32[32,1], index: 3, kind: input, shape index: {}]   ;;  %s2879_s4 = inlined_call_operand.vmem [shape: f32[2,32,16], index: 4, kind: output, shape index: {}]  }
   0x1   :  { %v2284_v0 = vld [vmem:[%s2875_s0 + $0x18] sm:$0xff]   ;;  %v2285_v1 = vld [vmem:[%s2875_s0 + $0x10] sm:$0xff]   ;;  %v2288_v2 = vld [vmem:[%s2876_s1] sm:$0xff]   ;;  %s2383_s21 = smov 32   ;;  %s2384_s22 = smov 112  }
   0x2   :  { %49 = vrot.lane.b32.xlu0 %v2284_v0, %s2378_s17  ;;  %2042 = vmatprep.mubr.msk.bf16.mxu0 %vm228_vm0, %v2288_v2  ;;  %v2286_v3 = vld [vmem:[%s2875_s0 + $0x8] sm:$0xff]   ;;  %v2287_v6 = vld [vmem:[%s2875_s0] sm:$0xff]   ;;  %v2290_v10 = vld [vmem:[%s2876_s1 + $0x10] sm:$0xff]  }
   0x3   :  { %v2289_v9 = vld [vmem:[%s2876_s1 + $0x8] sm:$0xff]   ;;  %v2291_v11 = vld [vmem:[%s2876_s1 + $0x18] sm:$0xff]   ;;  %v2292_v12 = vld [vmem:[%s2876_s1 + $0x20] sm:$0xff]  }
   0x4   :  { %v2293_v13 = vld [vmem:[%s2876_s1 + $0x28] sm:$0xff]   ;;  %v2294_v14 = vld [vmem:[%s2876_s1 + $0x30] sm:$0xff]   ;;  %v2295_v15 = vld [vmem:[%s2876_s1 + $0x38] sm:$0xff]  }
   0x5   :  { %v2296_v16 = vld [vmem:[%s2876_s1 + $0x40] sm:$0xff]   ;;  %v2297_v17 = vld [vmem:[%s2876_s1 + $0x48] sm:$0xff]   ;;  %v2300_v20 = vld [vmem:[%s2876_s1 + $0xb0] sm:$0xff]  }
   0x6   :  { %47 = vrot.lane.b32.xlu0 %v2285_v1, %s2378_s17  ;;  %v2298_v18 = vld [vmem:[%s2876_s1 + $0xa0] sm:$0xff]   ;;  %v2299_v19 = vld [vmem:[%s2876_s1 + $0xa8] sm:$0xff]   ;;  %v2301_v22 = vld [vmem:[%s2876_s1 + $0xb8] sm:$0xff]  }
   0x7   :  { %2082 = vmatprep.mubr.msk.bf16.mxu1 %vm228_vm0, %v2298_v18  ;;  %v2302_v58 = vld [vmem:[%s2876_s1 + $0x50] sm:$0xff]   ;;  %v2303_v59 = vld [vmem:[%s2876_s1 + $0x58] sm:$0xff]   ;;  %v2304_v60 = vld [vmem:[%s2876_s1 + $0x60] sm:$0xff]  }
   0x8   :  { %v2305_v61 = vld [vmem:[%s2876_s1 + $0x68] sm:$0xff]   ;;  %v2306_v62 = vld [vmem:[%s2876_s1 + $0x70] sm:$0xff]   ;;  %v2307_v63 = vld [vmem:[%s2876_s1 + $0x78] sm:$0xff]  }
   0x9   :  { %v2308_v0 = vld [vmem:[%s2876_s1 + $0x80] sm:$0xff]   ;;  %v2309_v1 = vld [vmem:[%s2876_s1 + $0x88] sm:$0xff]  }
  0x74   :  { %v50_v4 = vpop.permute.xlu0 %49 }
  0x75   :  { %v58_v5 = vsel %vm51_vm1, %v2286_v3, %v50_v4 }
  0x76   :  { %2038 = vmatprep.subr.bf16.mxu0 %v58_v5  ;;  %2222 = vmatprep.subr.bf16.mxu1 %v58_v5 }
  0x77   :  { %2039 = vmatpush3.bf16.msra.mxu0 %v58_v5  ;;  %2224 = vmatpush3.bf16.msra.mxu1 %v58_v5 }
  0x78   :  { %v48_v7 = vpop.permute.xlu0 %47 }
  0x79   :  { %v54_v8 = vsel %vm51_vm1, %v2287_v6, %v48_v7 }
  0x7a   :  { %2040 = vmatprep.subr.bf16.mxu0 %v54_v8  ;;  %2223 = vmatprep.subr.bf16.mxu1 %v54_v8 }
  0x7b   :  { %2041 = vmatpush3.bf16.msra.mxu0 %v54_v8  ;;  %2225 = vmatpush3.bf16.msra.mxu1 %v54_v8 }
  0x7c   :  { %2090 = vmatprep.subr.bf16.mxu1 %v2379_v21  ;;  %2174 = vmatprep.subr.bf16.mxu0 %v2379_v21 }
  0x7e   :  { %2043 = vmatmul.mubr.msk.bf16.vlgmr.msra.gmra.mxu0 %vm228_vm0, %v2289_v9  ;;  %2083 = vmatmul.mubr.msk.bf16.vlgmr.msra.gmra.mxu1 %vm228_vm0, %v2299_v19 }
  0x7f   :  { %2046 = vmatprep.mubr.msk.bf16.mxu0 %vm228_vm0, %v2290_v10  ;;  %2086 = vmatprep.mubr.msk.bf16.mxu1 %vm228_vm0, %v2300_v20 }
  0x86   :  { %2047 = vmatmul.mubr.msk.bf16.gmra.mxu0 %vm228_vm0, %v2291_v11  ;;  %2087 = vmatmul.mubr.msk.bf16.gmra.mxu1 %vm228_vm0, %v2301_v22 }
  0x87   :  { %2050 = vmatprep.mubr.msk.bf16.mxu0 %vm228_vm0, %v2292_v12  ;;  %2094 = vmatprep.mubr.msk.bf16.mxu1 %vm2380_vm2, %v2379_v21 }
  0x8e   :  { %2051 = vmatmul.mubr.msk.bf16.gmra.mxu0 %vm228_vm0, %v2293_v13 }
  0x8f   :  { %2054 = vmatprep.mubr.msk.bf16.mxu0 %vm228_vm0, %v2294_v14 }
  0x96   :  { %2055 = vmatmul.mubr.msk.bf16.gmra.mxu0 %vm228_vm0, %v2295_v15 }
  0x97   :  { %2058 = vmatprep.mubr.msk.bf16.mxu0 %vm228_vm0, %v2296_v16 }
  0x9e   :  { %2059 = vmatmul.mubr.msk.bf16.gmra.mxu0 %vm228_vm0, %v2297_v17 }
  0x9f   :  { %2062 = vmatprep.mubr.msk.bf16.mxu0 %vm228_vm0, %v2302_v58 }
  0xa6   :  { %2063 = vmatmul.mubr.msk.bf16.gmra.mxu0 %vm228_vm0, %v2303_v59 }
  0xa7   :  { %2066 = vmatprep.mubr.msk.bf16.mxu0 %vm228_vm0, %v2304_v60 }
  0xae   :  { %2067 = vmatmul.mubr.msk.bf16.gmra.mxu0 %vm228_vm0, %v2305_v61 }
  0xaf   :  { %2070 = vmatprep.mubr.msk.bf16.mxu0 %vm228_vm0, %v2306_v62  ;;  %v2310_v62 = vld [vmem:[%s2876_s1 + $0x90] sm:$0xff]  }
  0xb6   :  { %2071 = vmatmul.mubr.msk.bf16.gmra.mxu0 %vm228_vm0, %v2307_v63  ;;  %v2311_v63 = vld [vmem:[%s2876_s1 + $0x98] sm:$0xff]   ;;  %s2382_s1 = smov 64  }
  0xb7   :  { %2074 = vmatprep.mubr.msk.bf16.mxu0 %vm228_vm0, %v2308_v0 }
  0xbe   :  { %2075 = vmatmul.mubr.msk.bf16.gmra.mxu0 %vm228_vm0, %v2309_v1 }
  0xbf   :  { %2078 = vmatprep.mubr.msk.bf16.mxu0 %vm228_vm0, %v2310_v62 }
  0xc6   :  { %2079 = vmatmul.mubr.msk.bf16.gmra.mxu0 %vm228_vm0, %v2311_v63 }
  0xc7   :  { %2178 = vmatprep.mubr.msk.bf16.mxu0 %vm2380_vm2, %v2379_v21 }
 0x13e   :  { %v2044_v23 = vpop.f32.mrf.mxu0  ;;  %v2084_v46 = vpop.f32.mrf.mxu1 }
 0x140   :  { %v335_v24 = vpop.f32.mrf.mxu0  ;;  %v495_v49 = vpop.f32.mrf.mxu1 }
 0x141   :  { %526 = vxpose.xlu1.b32.start [1/16] (narrow) %v335_v24, 32 }
 0x142   :  { %v2045_v25 = vpop.f32.mrf.mxu0  ;;  %v2085_v50 = vpop.f32.mrf.mxu1 }
 0x143   :  { %v2498_v51 = vpack.c.bf16 %v2085_v50, %v2084_v46 }
 0x144   :  { %v338_v26 = vpop.f32.mrf.mxu0  ;;  %v498_v52 = vpop.f32.mrf.mxu1 }
 0x145   :  { %527 = vxpose.xlu1.b32.cont [2/16] (narrow) %v338_v26, 32  ;;  %v2500_v53 = vpack.c.bf16 %v498_v52, %v495_v49 }
 0x146   :  { %v2048_v27 = vpop.f32.mrf.mxu0  ;;  %v2088_v54 = vpop.f32.mrf.mxu1 }
 0x148   :  { %v351_v28 = vpop.f32.mrf.mxu0  ;;  %v2502_v55 = vpop.f32.mrf.mxu1 }
 0x149   :  { %528 = vxpose.xlu1.b32.cont [3/16] (narrow) %v2044_v23, 32 }
 0x14a   :  { %v2049_v29 = vpop.f32.mrf.mxu0  ;;  %v2089_v56 = vpop.f32.mrf.mxu1 }
 0x14b   :  { %v2504_v57 = vpack.c.bf16 %v2089_v56, %v2088_v54 }
 0x14c   :  { %v354_v30 = vpop.f32.mrf.mxu0  ;;  %v2538_v2 = vpop.f32.mrf.mxu1 }
 0x14d   :  { %529 = vxpose.xlu1.b32.cont [4/16] (narrow) %v2045_v25, 32 }
 0x14e   :  { %v2052_v31 = vpop.f32.mrf.mxu0 }
 0x150   :  { %v367_v32 = vpop.f32.mrf.mxu0 }
 0x151   :  { %530 = vxpose.xlu1.b32.cont [5/16] (narrow) %v351_v28, 32 }
 0x152   :  { %v2053_v33 = vpop.f32.mrf.mxu0 }
 0x154   :  { %v370_v34 = vpop.f32.mrf.mxu0 }
 0x155   :  { %531 = vxpose.xlu1.b32.cont [6/16] (narrow) %v354_v30, 32 }
 0x156   :  { %v2056_v35 = vpop.f32.mrf.mxu0 }
 0x158   :  { %v383_v36 = vpop.f32.mrf.mxu0 }
 0x159   :  { %532 = vxpose.xlu1.b32.cont [7/16] (narrow) %v2048_v27, 32 }
 0x15a   :  { %v2057_v37 = vpop.f32.mrf.mxu0 }
 0x15c   :  { %v386_v38 = vpop.f32.mrf.mxu0 }
 0x15d   :  { %533 = vxpose.xlu1.b32.cont [8/16] (narrow) %v2049_v29, 32 }
 0x15e   :  { %v2060_v39 = vpop.f32.mrf.mxu0 }
 0x160   :  { %v399_v40 = vpop.f32.mrf.mxu0 }
 0x161   :  { %534 = vxpose.xlu1.b32.cont [9/16] (narrow) %v367_v32, 32 }
 0x162   :  { %v2061_v41 = vpop.f32.mrf.mxu0 }
 0x163   :  { %v2487_v42 = vpack.c.bf16 %v2061_v41, %v2060_v39 }
 0x164   :  { %v402_v43 = vpop.f32.mrf.mxu0 }
 0x165   :  { %535 = vxpose.xlu1.b32.cont [10/16] (narrow) %v370_v34, 32  ;;  %2091 = vmatpush3.bf16.msra.mxu1 %v2487_v42  ;;  %v2490_v44 = vpack.c.bf16 %v402_v43, %v399_v40 }
 0x166   :  { %2092 = vmatprep.subr.bf16.mxu1 %v2379_v21  ;;  %v2064_v11 = vpop.f32.mrf.mxu0 }
 0x168   :  { %v415_v12 = vpop.f32.mrf.mxu0 }
 0x169   :  { %536 = vxpose.xlu1.b32.cont [11/16] (narrow) %v2052_v31, 32  ;;  %2093 = vmatpush3.bf16.msra.mxu1 %v2490_v44 }
 0x16a   :  { %v2065_v13 = vpop.f32.mrf.mxu0 }
 0x16b   :  { %v2542_v14 = vpack.c.bf16 %v2065_v13, %v2064_v11 }
 0x16c   :  { %v418_v15 = vpop.f32.mrf.mxu0 }
 0x16d   :  { %537 = vxpose.xlu1.b32.cont [12/16] (narrow) %v2053_v33, 32  ;;  %v2544_v16 = vpack.c.bf16 %v418_v15, %v415_v12 }
 0x16e   :  { %v2068_v28 = vpop.f32.mrf.mxu0 }
 0x170   :  { %v431_v29 = vpop.f32.mrf.mxu0 }
 0x171   :  { %538 = vxpose.xlu1.b32.cont [13/16] (narrow) %v383_v36, 32 }
 0x172   :  { %v2069_v30 = vpop.f32.mrf.mxu0 }
 0x173   :  { %v2548_v31 = vpack.c.bf16 %v2069_v30, %v2068_v28 }
 0x174   :  { %v434_v32 = vpop.f32.mrf.mxu0 }
 0x175   :  { %539 = vxpose.xlu1.b32.cont [14/16] (narrow) %v386_v38, 32  ;;  %v2550_v33 = vpack.c.bf16 %v434_v32, %v431_v29 }
 0x176   :  { %v2072_v34 = vpop.f32.mrf.mxu0 }
 0x179   :  { %540 = vxpose.xlu1.b32.cont [15/16] (narrow) %v2056_v35, 32  ;;  %v447_v35 = vpop.f32.mrf.mxu0 }
 0x17b   :  { %v2073_v36 = vpop.f32.mrf.mxu0 }
 0x17d   :  { %541 = vxpose.xlu1.b32.end [16/16] (narrow) %v2057_v37, 32  ;;  %v2552_v37 = vpack.c.bf16 %v2073_v36, %v2072_v34  ;;  %v450_v38 = vpop.f32.mrf.mxu0 }
 0x17e   :  { %v2554_v39 = vpack.c.bf16 %v450_v38, %v447_v35 }
 0x17f   :  { %v2076_v40 = vpop.f32.mrf.mxu0 }
 0x181   :  { %v463_v41 = vpop.f32.mrf.mxu0 }
 0x183   :  { %v2077_v43 = vpop.f32.mrf.mxu0 }
 0x185   :  { %v466_v46 = vpop.f32.mrf.mxu0 }
 0x187   :  { %v2080_v28 = vpop.f32.mrf.mxu0 }
 0x189   :  { %v479_v29 = vpop.f32.mrf.mxu0 }
 0x18b   :  { %v2081_v30 = vpop.f32.mrf.mxu0 }
 0x18c   :  { %v2603_v32 = vpack.c.bf16 %v2081_v30, %v2080_v28 }
 0x18d   :  { %v482_v34 = vpop.f32.mrf.mxu0 }
 0x18e   :  { %v2605_v35 = vpack.c.bf16 %v482_v34, %v479_v29 }
 0x1bd   :  { %v542_v45 = vpop.trf.xlu1 }
 0x1c1   :  { %v543_v47 = vpop.trf.xlu1 }
 0x1c2   :  { %v2494_v48 = vpack.c.bf16 %v543_v47, %v542_v45  ;;  %v2558_v45 = vpack.c.bf16 %v2077_v43, %v2076_v40  ;;  %v2560_v47 = vpack.c.bf16 %v466_v46, %v463_v41 }
 0x1c4   :  { %2095 = vmatmul.mubr.msk.bf16.vlgmr.msra.gmra.mxu1 %vm228_vm0, %v2494_v48 }
 0x1c5   :  { %2100 = vmatprep.mubr.msk.bf16.mxu1 %vm51_vm1, %v2560_v47  ;;  %v2595_v13 = vpop.trf.xlu1 }
 0x1c9   :  { %v2597_v15 = vpop.trf.xlu1 }
 0x284   :  { %v613_v3 = vpop.f32.mrf.mxu1 }
 0x285   :  { %v620_v4 = vmul.f32 0.17677669, %v613_v3 }
 0x286   :  { %v2096_v5 = vpop.f32.mrf.mxu1 }
 0x287   :  { %v622_v6 = vsel %vm51_vm1, %v620_v4, -inf }
 0x288   :  { %623 = vmax.xlane.f32.xlu0 %v622_v6  ;;  %v616_v7 = vpop.f32.mrf.mxu1 }
 0x289   :  { %v621_v8 = vmul.f32 0.17677669, %v616_v7 }
 0x28a   :  { %v2097_v9 = vpop.f32.mrf.mxu1 }
 0x28b   :  { %v625_v10 = vsel %vm51_vm1, %v621_v8, -inf }
 0x28c   :  { %626 = vmax.xlane.f32.xlu0 %v625_v10 }
 0x311   :  { %v624_v17 = vpop.xlane.xlu0 %623 }
 0x312   :  { %v628_v18 = vsub.f32 %v620_v4, %v624_v17 }
 0x314   :  { %v630_v19 = vmul.f32 1.442695, %v628_v18 }
 0x315   :  { %v627_v20 = vpop.xlane.xlu0 %626 }
 0x316   :  { %2314 = vpow2.f32 %v630_v19  ;;  %v629_v22 = vsub.f32 %v621_v8, %v627_v20 }
 0x318   :  { %v632_v23 = vmul.f32 1.442695, %v629_v22 }
 0x31a   :  { %2316 = vpow2.f32 %v632_v23 }
 0x323   :  { %v2315_v24 = vpop.eup %2314 }
 0x324   :  { %v634_v25 = vsel %vm51_vm1, %v2315_v24, 0.0 }
 0x325   :  { %635 = vadd.xlane.f32.xlu0 %v634_v25 }
 0x327   :  { %v2317_v26 = vpop.eup %2316 }
 0x328   :  { %v637_v27 = vsel %vm51_vm1, %v2317_v26, 0.0 }
 0x329   :  { %638 = vadd.xlane.f32.xlu0 %v637_v27 }
 0x33f   :  { %704 = vrot.lane.b32.xlu0 %v2494_v48, %s2381_s15 }
 0x3ae   :  { %v636_v49 = vpop.xlane.xlu0 %635 }
 0x3af   :  { %2318 = vrcp.f32 %v636_v49 }
 0x3b2   :  { %v639_v50 = vpop.xlane.xlu0 %638 }
 0x3b3   :  { %2320 = vrcp.f32 %v639_v50 }
 0x3b6   :  { %v705_v61 = vpop.permute.xlu0 %704 }
 0x3bc   :  { %v2319_v52 = vpop.eup %2318 }
 0x3bd   :  { %v642_v56 = vmul.f32 %v2319_v52, %v2315_v24 }
 0x3c0   :  { %v2321_v54 = vpop.eup %2320 }
 0x3c1   :  { %v643_v58 = vmul.f32 %v2321_v54, %v2317_v26 }
 0x3c3   :  { %v644_v59 = vpack.c.bf16 %v643_v58, %v642_v56 }
 0x3c5   :  { %2226 = vmatprep.subr.msk.bf16.mxu1 %vm51_vm1, %v644_v59  ;;  %v652_v60 = vsel %vm51_vm1, %v644_v59, 0 }
 0x3c6   :  { %2099 = vmatpush3.bf16.xpose.msra.mxu1 %v652_v60 }
 0x3c7   :  { %2104 = vmatprep.subr.bf16.mxu1 %v2379_v21 }
 0x3cd   :  { %2101 = vmatmul.mubr.msk.bf16.vlgmr.msra.gmra.mxu1 %vm51_vm1, %v2558_v45 }
 0x3ce   :  { %2105 = vmatpush3.bf16.msra.mxu1 %v2542_v14  ;;  %2108 = vmatprep.mubr.msk.bf16.mxu1 %vm2380_vm2, %v2379_v21 }
 0x3cf   :  { %2106 = vmatprep.subr.bf16.mxu1 %v2379_v21 }
 0x3d2   :  { %2107 = vmatpush3.bf16.msra.mxu1 %v2544_v16 }
 0x3d5   :  { %2109 = vmatmul.mubr.msk.bf16.vlgmr.msra.gmra.mxu1 %vm228_vm0, %v705_v61 }
 0x3d6   :  { %2114 = vmatprep.mubr.msk.bf16.mxu1 %vm51_vm1, %v2605_v35 }
 0x48d   :  { %v2585_v0 = vpop.f32.mrf.mxu1 }
 0x48f   :  { %v2587_v1 = vpop.f32.mrf.mxu1 }
 0x491   :  { %v2589_v3 = vpop.f32.mrf.mxu1 }
 0x493   :  { %v2591_v4 = vpop.f32.mrf.mxu1 }
 0x495   :  { %v743_v5 = vpop.f32.mrf.mxu1 }
 0x496   :  { %v750_v6 = vmul.f32 0.17677669, %v743_v5 }
 0x497   :  { %v2110_v7 = vpop.f32.mrf.mxu1 }
 0x498   :  { %v752_v8 = vsel %vm51_vm1, %v750_v6, -inf }
 0x499   :  { %753 = vmax.xlane.f32.xlu1 %v752_v8  ;;  %v746_v9 = vpop.f32.mrf.mxu1 }
 0x49a   :  { %v751_v10 = vmul.f32 0.17677669, %v746_v9 }
 0x49b   :  { %v2111_v11 = vpop.f32.mrf.mxu1 }
 0x49c   :  { %v755_v12 = vsel %vm51_vm1, %v751_v10, -inf }
 0x49d   :  { %756 = vmax.xlane.f32.xlu0 %v755_v12 }
 0x522   :  { %v754_v17 = vpop.xlane.xlu1 %753 }
 0x523   :  { %v758_v18 = vsub.f32 %v750_v6, %v754_v17 }
 0x525   :  { %v760_v19 = vmul.f32 1.442695, %v758_v18 }
 0x526   :  { %v757_v20 = vpop.xlane.xlu0 %756 }
 0x527   :  { %2322 = vpow2.f32 %v760_v19  ;;  %v759_v22 = vsub.f32 %v751_v10, %v757_v20 }
 0x529   :  { %v762_v23 = vmul.f32 1.442695, %v759_v22 }
 0x52b   :  { %2324 = vpow2.f32 %v762_v23 }
 0x534   :  { %v2323_v24 = vpop.eup %2322 }
 0x535   :  { %v764_v25 = vsel %vm51_vm1, %v2323_v24, 0.0 }
 0x536   :  { %765 = vadd.xlane.f32.xlu1 %v764_v25 }
 0x538   :  { %v2325_v26 = vpop.eup %2324 }
 0x539   :  { %v767_v27 = vsel %vm51_vm1, %v2325_v26, 0.0 }
 0x53a   :  { %768 = vadd.xlane.f32.xlu0 %v767_v27 }
 0x547   :  { %833 = vrot.lane.b32.xlu1 %v2494_v48, %s2382_s1 }
 0x5bf   :  { %v766_v36 = vpop.xlane.xlu1 %765 }
 0x5c0   :  { %2326 = vrcp.f32 %v766_v36 }
 0x5c3   :  { %v769_v38 = vpop.xlane.xlu0 %768  ;;  %v834_v52 = vpop.permute.xlu1 %833 }
 0x5c4   :  { %2328 = vrcp.f32 %v769_v38 }
 0x5cd   :  { %v2327_v40 = vpop.eup %2326 }
 0x5ce   :  { %v772_v43 = vmul.f32 %v2327_v40, %v2323_v24 }
 0x5d1   :  { %v2329_v41 = vpop.eup %2328 }
 0x5d2   :  { %v773_v46 = vmul.f32 %v2329_v41, %v2325_v26 }
 0x5d4   :  { %v774_v49 = vpack.c.bf16 %v773_v46, %v772_v43 }
 0x5d6   :  { %2227 = vmatprep.subr.msk.bf16.mxu1 %vm51_vm1, %v774_v49  ;;  %v782_v50 = vsel %vm51_vm1, %v774_v49, 0 }
 0x5d7   :  { %2113 = vmatpush3.bf16.xpose.msra.mxu1 %v782_v50 }
 0x5d8   :  { %2118 = vmatprep.subr.bf16.mxu1 %v2379_v21 }
 0x5de   :  { %2115 = vmatmul.mubr.msk.bf16.vlgmr.msra.gmra.mxu1 %vm51_vm1, %v2603_v32 }
 0x5df   :  { %2119 = vmatpush3.bf16.msra.mxu1 %v2548_v31  ;;  %2122 = vmatprep.mubr.msk.bf16.mxu1 %vm2380_vm2, %v2379_v21 }
 0x5e0   :  { %2120 = vmatprep.subr.bf16.mxu1 %v2379_v21 }
 0x5e3   :  { %2121 = vmatpush3.bf16.msra.mxu1 %v2550_v33 }
 0x5e6   :  { %2123 = vmatmul.mubr.msk.bf16.vlgmr.msra.gmra.mxu1 %vm228_vm0, %v834_v52 }
 0x5e7   :  { %2128 = vmatprep.mubr.msk.bf16.mxu1 %vm51_vm1, %v2500_v53 }
 0x69e   :  { %v2622_v54 = vpop.f32.mrf.mxu1 }
 0x6a0   :  { %v2624_v56 = vpop.f32.mrf.mxu1 }
 0x6a2   :  { %v2626_v58 = vpop.f32.mrf.mxu1 }
 0x6a4   :  { %v2628_v59 = vpop.f32.mrf.mxu1 }
 0x6a6   :  { %v872_v60 = vpop.f32.mrf.mxu1 }
 0x6a7   :  { %v879_v61 = vmul.f32 0.17677669, %v872_v60 }
 0x6a8   :  { %v2124_v62 = vpop.f32.mrf.mxu1 }
 0x6a9   :  { %v881_v63 = vsel %vm51_vm1, %v879_v61, -inf }
 0x6aa   :  { %882 = vmax.xlane.f32.xlu0 %v881_v63  ;;  %v875_v5 = vpop.f32.mrf.mxu1 }
 0x6ab   :  { %v880_v6 = vmul.f32 0.17677669, %v875_v5 }
 0x6ac   :  { %v2125_v7 = vpop.f32.mrf.mxu1 }
 0x6ad   :  { %v884_v8 = vsel %vm51_vm1, %v880_v6, -inf }
 0x6ae   :  { %885 = vmax.xlane.f32.xlu0 %v884_v8 }
 0x733   :  { %v883_v9 = vpop.xlane.xlu0 %882 }
 0x734   :  { %v887_v10 = vsub.f32 %v879_v61, %v883_v9 }
 0x736   :  { %v889_v11 = vmul.f32 1.442695, %v887_v10 }
 0x737   :  { %v886_v12 = vpop.xlane.xlu0 %885 }
 0x738   :  { %2330 = vpow2.f32 %v889_v11  ;;  %v888_v17 = vsub.f32 %v880_v6, %v886_v12 }
 0x73a   :  { %v891_v18 = vmul.f32 1.442695, %v888_v17 }
 0x73c   :  { %2332 = vpow2.f32 %v891_v18 }
 0x745   :  { %v2331_v19 = vpop.eup %2330 }
 0x746   :  { %v893_v20 = vsel %vm51_vm1, %v2331_v19, 0.0 }
 0x747   :  { %894 = vadd.xlane.f32.xlu0 %v893_v20 }
 0x749   :  { %v2333_v22 = vpop.eup %2332 }
 0x74a   :  { %v896_v23 = vsel %vm51_vm1, %v2333_v22, 0.0 }
 0x74b   :  { %897 = vadd.xlane.f32.xlu0 %v896_v23 }
 0x761   :  { %962 = vrot.lane.b32.xlu0 %v2494_v48, %s2383_s21  ;;  %v2648_v48 = vpack.c.bf16 %v2538_v2, %v2502_v55 }
 0x7d0   :  { %v895_v24 = vpop.xlane.xlu0 %894 }
 0x7d1   :  { %2334 = vrcp.f32 %v895_v24 }
 0x7d4   :  { %v898_v25 = vpop.xlane.xlu0 %897 }
 0x7d5   :  { %2336 = vrcp.f32 %v898_v25 }
 0x7d8   :  { %v963_v36 = vpop.permute.xlu0 %962 }
 0x7de   :  { %v2335_v26 = vpop.eup %2334 }
 0x7df   :  { %v901_v28 = vmul.f32 %v2335_v26, %v2331_v19  ;;  %v559_v26 = vpack.c.bf16 %v2597_v15, %v2595_v13 }
 0x7e2   :  { %v2337_v27 = vpop.eup %2336 }
 0x7e3   :  { %v902_v29 = vmul.f32 %v2337_v27, %v2333_v22 }
 0x7e5   :  { %v903_v30 = vpack.c.bf16 %v902_v29, %v901_v28 }
 0x7e7   :  { %2228 = vmatprep.subr.msk.bf16.mxu1 %vm51_vm1, %v903_v30  ;;  %v911_v34 = vsel %vm51_vm1, %v903_v30, 0 }
 0x7e8   :  { %2127 = vmatpush3.bf16.xpose.msra.mxu1 %v911_v34 }
 0x7e9   :  { %2132 = vmatprep.subr.bf16.mxu1 %v2379_v21 }
 0x7ef   :  { %2129 = vmatmul.mubr.msk.bf16.vlgmr.msra.gmra.mxu1 %vm51_vm1, %v2498_v51 }
 0x7f0   :  { %2133 = vmatpush3.bf16.msra.mxu1 %v2552_v37  ;;  %2136 = vmatprep.mubr.msk.bf16.mxu1 %vm2380_vm2, %v2379_v21 }
 0x7f1   :  { %2134 = vmatprep.subr.bf16.mxu1 %v2379_v21 }
 0x7f4   :  { %2135 = vmatpush3.bf16.msra.mxu1 %v2554_v39 }
 0x7f7   :  { %2137 = vmatmul.mubr.msk.bf16.vlgmr.msra.gmra.mxu1 %vm228_vm0, %v963_v36 }
 0x7f8   :  { %2142 = vmatprep.mubr.msk.bf16.mxu1 %vm51_vm1, %v2648_v48 }
 0x8af   :  { %v2653_v38 = vpop.f32.mrf.mxu1 }
 0x8b1   :  { %v2655_v40 = vpop.f32.mrf.mxu1 }
 0x8b3   :  { %v2657_v41 = vpop.f32.mrf.mxu1 }
 0x8b5   :  { %v2659_v43 = vpop.f32.mrf.mxu1 }
 0x8b7   :  { %v1001_v46 = vpop.f32.mrf.mxu1 }
 0x8b8   :  { %v1008_v49 = vmul.f32 0.17677669, %v1001_v46 }
 0x8b9   :  { %v2138_v50 = vpop.f32.mrf.mxu1 }
 0x8ba   :  { %v1010_v55 = vsel %vm51_vm1, %v1008_v49, -inf }
 0x8bb   :  { %1011 = vmax.xlane.f32.xlu1 %v1010_v55  ;;  %v1004_v2 = vpop.f32.mrf.mxu1 }
 0x8bc   :  { %v1009_v52 = vmul.f32 0.17677669, %v1004_v2 }
 0x8bd   :  { %v2139_v60 = vpop.f32.mrf.mxu1 }
 0x8be   :  { %v1013_v61 = vsel %vm51_vm1, %v1009_v52, -inf }
 0x8bf   :  { %1014 = vmax.xlane.f32.xlu0 %v1013_v61 }
 0x8d5   :  { %1093 = vrot.lane.b32.xlu0 %v2490_v44, %s2384_s22 }
 0x944   :  { %v1012_v62 = vpop.xlane.xlu1 %1011 }
 0x945   :  { %v1016_v63 = vsub.f32 %v1008_v49, %v1012_v62 }
 0x947   :  { %v1018_v5 = vmul.f32 1.442695, %v1016_v63 }
 0x948   :  { %v1015_v6 = vpop.xlane.xlu0 %1014 }
 0x949   :  { %2338 = vpow2.f32 %v1018_v5  ;;  %v1017_v7 = vsub.f32 %v1009_v52, %v1015_v6 }
 0x94b   :  { %v1020_v8 = vmul.f32 1.442695, %v1017_v7 }
 0x94d   :  { %2340 = vpow2.f32 %v1020_v8 }
 0x956   :  { %v2339_v9 = vpop.eup %2338 }
 0x957   :  { %v1022_v10 = vsel %vm51_vm1, %v2339_v9, 0.0 }
 0x958   :  { %1023 = vadd.xlane.f32.xlu1 %v1022_v10 }
 0x95a   :  { %v2341_v11 = vpop.eup %2340 }
 0x95b   :  { %v1025_v12 = vsel %vm51_vm1, %v2341_v11, 0.0 }
 0x95c   :  { %1026 = vadd.xlane.f32.xlu1 %v1025_v12 }
 0x96d   :  { %1095 = vrot.lane.b32.xlu1 %v2487_v42, %s2384_s22  ;;  %v1094_v42 = vpop.permute.xlu0 %1093 }
 0x9e1   :  { %v1024_v44 = vpop.xlane.xlu1 %1023 }
 0x9e2   :  { %2342 = vrcp.f32 %v1024_v44 }
 0x9e5   :  { %v1027_v17 = vpop.xlane.xlu1 %1026 }
 0x9e6   :  { %2344 = vrcp.f32 %v1027_v17 }
 0x9e9   :  { %v1096_v25 = vpop.permute.xlu1 %1095 }
 0x9ef   :  { %v2343_v18 = vpop.eup %2342 }
 0x9f0   :  { %v1030_v20 = vmul.f32 %v2343_v18, %v2339_v9 }
 0x9f3   :  { %v2345_v19 = vpop.eup %2344 }
 0x9f4   :  { %v1031_v22 = vmul.f32 %v2345_v19, %v2341_v11 }
 0x9f6   :  { %v1032_v23 = vpack.c.bf16 %v1031_v22, %v1030_v20 }
 0x9f8   :  { %2229 = vmatprep.subr.msk.bf16.mxu1 %vm51_vm1, %v1032_v23  ;;  %v1040_v24 = vsel %vm51_vm1, %v1032_v23, 0 }
 0x9f9   :  { %2141 = vmatpush3.bf16.xpose.msra.mxu1 %v1040_v24 }
 0x9fa   :  { %2146 = vmatprep.subr.bf16.mxu1 %v2379_v21 }
 0xa00   :  { %2143 = vmatmul.mubr.msk.bf16.vlgmr.msra.gmra.mxu1 %vm51_vm1, %v2504_v57 }
 0xa01   :  { %2147 = vmatpush3.bf16.msra.mxu1 %v1096_v25  ;;  %2150 = vmatprep.mubr.msk.bf16.mxu1 %vm2380_vm2, %v2379_v21 }
 0xa02   :  { %2148 = vmatprep.subr.bf16.mxu1 %v2379_v21 }
 0xa05   :  { %2149 = vmatpush3.bf16.msra.mxu1 %v1094_v42 }
 0xa08   :  { %2151 = vmatmul.mubr.msk.bf16.vlgmr.msra.gmra.mxu1 %vm228_vm0, %v559_v26 }
 0xac0   :  { %v2680_v27 = vpop.f32.mrf.mxu1 }
 0xac2   :  { %v2682_v28 = vpop.f32.mrf.mxu1 }
 0xac4   :  { %v2684_v29 = vpop.f32.mrf.mxu1 }
 0xac6   :  { %v2686_v30 = vpop.f32.mrf.mxu1 }
 0xac8   :  { %v1136_v34 = vpop.f32.mrf.mxu1 }
 0xac9   :  { %v1143_v36 = vmul.f32 0.17677669, %v1136_v34 }
 0xaca   :  { %v2152_v46 = vpop.f32.mrf.mxu1 }
 0xacb   :  { %v1145_v49 = vsel %vm51_vm1, %v1143_v36, -inf }
 0xacc   :  { %1146 = vmax.xlane.f32.xlu1 %v1145_v49  ;;  %v1139_v50 = vpop.f32.mrf.mxu1 }
 0xacd   :  { %v1144_v55 = vmul.f32 0.17677669, %v1139_v50 }
 0xace   :  { %v2153_v2 = vpop.f32.mrf.mxu1 }
 0xacf   :  { %v1148_v13 = vsel %vm51_vm1, %v1144_v55, -inf }
 0xad0   :  { %1149 = vmax.xlane.f32.xlu0 %v1148_v13 }
 0xae6   :  { %1172 = vrot.lane.b32.xlu0 %v2558_v45, %s2384_s22 }
 0xaea   :  { %1233 = vrot.lane.b32.xlu0 %v559_v26, %s2381_s15 }
 0xaee   :  { %1380 = vrot.lane.b32.xlu0 %v2550_v33, %s2384_s22 }
 0xaf2   :  { %1525 = vrot.lane.b32.xlu0 %v2552_v37, %s2384_s22 }
 0xaf6   :  { %1519 = vrot.lane.b32.xlu0 %v559_v26, %s2383_s21 }
 0xb55   :  { %v1147_v15 = vpop.xlane.xlu1 %1146 }
 0xb56   :  { %v1151_v52 = vsub.f32 %v1143_v36, %v1147_v15 }
 0xb58   :  { %v1153_v60 = vmul.f32 1.442695, %v1151_v52 }
 0xb59   :  { %v1150_v61 = vpop.xlane.xlu0 %1149 }
 0xb5a   :  { %2346 = vpow2.f32 %v1153_v60  ;;  %v1152_v62 = vsub.f32 %v1144_v55, %v1150_v61 }
 0xb5c   :  { %v1155_v63 = vmul.f32 1.442695, %v1152_v62 }
 0xb5e   :  { %2348 = vpow2.f32 %v1155_v63 }
 0xb67   :  { %v2347_v5 = vpop.eup %2346 }
 0xb68   :  { %v1157_v45 = vsel %vm51_vm1, %v2347_v5, 0.0 }
 0xb69   :  { %1158 = vadd.xlane.f32.xlu1 %v1157_v45 }
 0xb6b   :  { %v2349_v6 = vpop.eup %2348 }
 0xb6c   :  { %v1160_v33 = vsel %vm51_vm1, %v2349_v6, 0.0 }
 0xb6d   :  { %1161 = vadd.xlane.f32.xlu1 %v1160_v33 }
 0xb7e   :  { %1170 = vrot.lane.b32.xlu1 %v2560_v47, %s2384_s22  ;;  %v1173_v47 = vpop.permute.xlu0 %1172 }
 0xb82   :  { %1239 = vrot.lane.b32.xlu1 %v2542_v14, %s2384_s22  ;;  %v1234_v10 = vpop.permute.xlu0 %1233 }
 0xb86   :  { %1237 = vrot.lane.b32.xlu1 %v2544_v16, %s2384_s22  ;;  %v1381_v18 = vpop.permute.xlu0 %1380 }
 0xb8a   :  { %1382 = vrot.lane.b32.xlu1 %v2548_v31, %s2384_s22  ;;  %v1526_v20 = vpop.permute.xlu0 %1525 }
 0xb8e   :  { %1376 = vrot.lane.b32.xlu1 %v559_v26, %s2382_s1  ;;  %v1520_v23 = vpop.permute.xlu0 %1519 }
 0xb92   :  { %1523 = vrot.lane.b32.xlu1 %v2554_v39, %s2384_s22 }
 0xbf2   :  { %v1159_v37 = vpop.xlane.xlu1 %1158 }
 0xbf3   :  { %2350 = vrcp.f32 %v1159_v37 }
 0xbf6   :  { %v1162_v7 = vpop.xlane.xlu1 %1161 }
 0xbf7   :  { %2352 = vrcp.f32 %v1162_v7 }
 0xbfa   :  { %v1171_v8 = vpop.permute.xlu1 %1170 }
 0xbfb   :  { %2156 = vmatprep.mubr.msk.bf16.mxu1 %vm51_vm1, %v1171_v8 }
 0xbfe   :  { %v1240_v14 = vpop.permute.xlu1 %1239 }
 0xc00   :  { %v2351_v9 = vpop.eup %2350 }
 0xc01   :  { %v1165_v12 = vmul.f32 %v2351_v9, %v2347_v5 }
 0xc02   :  { %v1238_v16 = vpop.permute.xlu1 %1237 }
 0xc04   :  { %v2353_v11 = vpop.eup %2352 }
 0xc05   :  { %v1166_v31 = vmul.f32 %v2353_v11, %v2349_v6 }
 0xc06   :  { %v1383_v44 = vpop.permute.xlu1 %1382 }
 0xc07   :  { %2175 = vmatpush3.bf16.msra.mxu0 %v1383_v44  ;;  %v1167_v17 = vpack.c.bf16 %v1166_v31, %v1165_v12 }
 0xc08   :  { %2176 = vmatprep.subr.bf16.mxu0 %v2379_v21 }
 0xc09   :  { %2230 = vmatprep.subr.msk.bf16.mxu1 %vm51_vm1, %v1167_v17  ;;  %v1181_v39 = vsel %vm51_vm1, %v1167_v17, 0 }
 0xc0a   :  { %2155 = vmatpush3.bf16.xpose.msra.mxu1 %v1181_v39  ;;  %v1377_v19 = vpop.permute.xlu1 %1376 }
 0xc0b   :  { %2177 = vmatpush3.bf16.msra.mxu0 %v1381_v18  ;;  %2160 = vmatprep.subr.bf16.mxu1 %v2379_v21 }
 0xc0c   :  { %2188 = vmatprep.subr.bf16.mxu0 %v2379_v21 }
 0xc0e   :  { %2179 = vmatmul.mubr.msk.bf16.vlgmr.msra.gmra.mxu0 %vm228_vm0, %v1377_v19  ;;  %v1524_v22 = vpop.permute.xlu1 %1523 }
 0xc0f   :  { %2189 = vmatpush3.bf16.msra.mxu0 %v1526_v20  ;;  %2192 = vmatprep.mubr.msk.bf16.mxu0 %vm2380_vm2, %v2379_v21 }
 0xc10   :  { %2190 = vmatprep.subr.bf16.mxu0 %v2379_v21 }
 0xc11   :  { %2157 = vmatmul.mubr.msk.bf16.vlgmr.msra.gmra.mxu1 %vm51_vm1, %v1173_v47 }
 0xc12   :  { %2161 = vmatpush3.bf16.msra.mxu1 %v1240_v14  ;;  %2164 = vmatprep.mubr.msk.bf16.mxu1 %vm2380_vm2, %v2379_v21 }
 0xc13   :  { %2191 = vmatpush3.bf16.msra.mxu0 %v1524_v22  ;;  %2162 = vmatprep.subr.bf16.mxu1 %v2379_v21 }
 0xc16   :  { %2163 = vmatpush3.bf16.msra.mxu1 %v1238_v16  ;;  %2193 = vmatmul.mubr.msk.bf16.vlgmr.msra.gmra.mxu0 %vm228_vm0, %v1520_v23 }
 0xc19   :  { %2165 = vmatmul.mubr.msk.bf16.vlgmr.msra.gmra.mxu1 %vm228_vm0, %v1234_v10 }
 0xcce   :  { %v1423_v24 = vpop.f32.mrf.mxu0 }
 0xccf   :  { %v1430_v33 = vmul.f32 0.17677669, %v1423_v24 }
 0xcd0   :  { %v2180_v25 = vpop.f32.mrf.mxu0 }
 0xcd1   :  { %v2727_v42 = vpop.f32.mrf.mxu1  ;;  %v1432_v9 = vsel %vm51_vm1, %v1430_v33, -inf }
 0xcd2   :  { %v1426_v26 = vpop.f32.mrf.mxu0 }
 0xcd3   :  { %v2729_v34 = vpop.f32.mrf.mxu1  ;;  %v1431_v61 = vmul.f32 0.17677669, %v1426_v26 }
 0xcd4   :  { %v2181_v36 = vpop.f32.mrf.mxu0 }
 0xcd5   :  { %v2731_v46 = vpop.f32.mrf.mxu1  ;;  %v1435_v7 = vsel %vm51_vm1, %v1431_v61, -inf }
 0xcd6   :  { %v2272_v49 = vpack.i.bf16 %v2731_v46, %v2727_v42  ;;  %v1566_v21 = vpop.f32.mrf.mxu0  ;;  %v1755_v42 = vld [vmem:[%s2878_s3 + $0x8] sm:$0xff]  ;;  %v1757_v46 = vld [vmem:[%s2878_s3 + $0x18] sm:$0xff] }
 0xcd7   :  { %v2735_v50 = vpop.f32.mrf.mxu1  ;;  %v1573_v47 = vmul.f32 0.17677669, %v1566_v21 }
 0xcd8   :  { %v2277_v55 = vpack.i.bf16 %v2735_v50, %v2729_v34  ;;  %v2194_v2 = vpop.f32.mrf.mxu0  ;;  %v1756_v34 = vld [vmem:[%s2878_s3 + $0x10] sm:$0xff] }
 0xcd9   :  { %v1280_v13 = vpop.f32.mrf.mxu1  ;;  %v1575_v10 = vsel %vm51_vm1, %v1573_v47, -inf }
 0xcda   :  { %v1287_v15 = vmul.f32 0.17677669, %v1280_v13  ;;  %v1569_v52 = vpop.f32.mrf.mxu0 }
 0xcdb   :  { %v2166_v60 = vpop.f32.mrf.mxu1  ;;  %v1574_v37 = vmul.f32 0.17677669, %v1569_v52 }
 0xcdc   :  { %v2195_v62 = vpop.f32.mrf.mxu0  ;;  %v1289_v63 = vsel %vm51_vm1, %v1287_v15, -inf }
 0xcdd   :  { %1290 = vmax.xlane.f32.xlu1 %v1289_v63  ;;  %v1283_v5 = vpop.f32.mrf.mxu1  ;;  %v1578_v14 = vsel %vm51_vm1, %v1574_v37, -inf }
 0xcde   :  { %v1288_v45 = vmul.f32 0.17677669, %v1283_v5 }
 0xcdf   :  { %v2167_v6 = vpop.f32.mrf.mxu1 }
 0xce0   :  { %v1292_v8 = vsel %vm51_vm1, %v1288_v45, -inf }
 0xce1   :  { %1436 = vmax.xlane.f32.xlu1 %v1435_v7  ;;  %1293 = vmax.xlane.f32.xlu0 %v1292_v8 }
 0xce5   :  { %1579 = vmax.xlane.f32.xlu1 %v1578_v14  ;;  %1433 = vmax.xlane.f32.xlu0 %v1432_v9 }
 0xce9   :  { %1576 = vmax.xlane.f32.xlu0 %v1575_v10 }
 0xd66   :  { %v1291_v16 = vpop.xlane.xlu1 %1290 }
 0xd67   :  { %v1295_v11 = vsub.f32 %v1287_v15, %v1291_v16 }
 0xd69   :  { %v1297_v12 = vmul.f32 1.442695, %v1295_v11 }
 0xd6a   :  { %v1437_v31 = vpop.xlane.xlu1 %1436  ;;  %v1294_v44 = vpop.xlane.xlu0 %1293 }
 0xd6b   :  { %2354 = vpow2.f32 %v1297_v12  ;;  %v1439_v17 = vsub.f32 %v1431_v61, %v1437_v31  ;;  %v1296_v18 = vsub.f32 %v1288_v45, %v1294_v44 }
 0xd6d   :  { %v1442_v39 = vmul.f32 1.442695, %v1439_v17  ;;  %v1299_v19 = vmul.f32 1.442695, %v1296_v18 }
 0xd6e   :  { %v1580_v20 = vpop.xlane.xlu1 %1579  ;;  %v1434_v22 = vpop.xlane.xlu0 %1433 }
 0xd6f   :  { %2356 = vpow2.f32 %v1442_v39  ;;  %v1582_v23 = vsub.f32 %v1574_v37, %v1580_v20  ;;  %v1438_v24 = vsub.f32 %v1430_v33, %v1434_v22 }
 0xd70   :  { %2358 = vpow2.f32 %v1299_v19 }
 0xd71   :  { %v1585_v25 = vmul.f32 1.442695, %v1582_v23  ;;  %v1440_v26 = vmul.f32 1.442695, %v1438_v24 }
 0xd72   :  { %v1577_v36 = vpop.xlane.xlu0 %1576 }
 0xd73   :  { %v1581_v21 = vsub.f32 %v1573_v47, %v1577_v36  ;;  %2360 = vpow2.f32 %v1440_v26 }
 0xd74   :  { %2362 = vpow2.f32 %v1585_v25 }
 0xd75   :  { %v1583_v2 = vmul.f32 1.442695, %v1581_v21 }
 0xd77   :  { %2364 = vpow2.f32 %v1583_v2 }
 0xd78   :  { %v2355_v13 = vpop.eup %2354 }
 0xd79   :  { %v1301_v15 = vsel %vm51_vm1, %v2355_v13, 0.0 }
 0xd7a   :  { %1302 = vadd.xlane.f32.xlu0 %v1301_v15 }
 0xd7c   :  { %v2357_v52 = vpop.eup %2356 }
 0xd7d   :  { %v1447_v60 = vsel %vm51_vm1, %v2357_v52, 0.0  ;;  %v2359_v61 = vpop.eup %2358 }
 0xd7e   :  { %1448 = vadd.xlane.f32.xlu1 %v1447_v60  ;;  %v1304_v63 = vsel %vm51_vm1, %v2359_v61, 0.0 }
 0xd80   :  { %v2361_v62 = vpop.eup %2360 }
 0xd81   :  { %v2363_v5 = vpop.eup %2362  ;;  %v1444_v45 = vsel %vm51_vm1, %v2361_v62, 0.0 }
 0xd82   :  { %1305 = vadd.xlane.f32.xlu1 %v1304_v63  ;;  %1445 = vadd.xlane.f32.xlu0 %v1444_v45  ;;  %v1590_v33 = vsel %vm51_vm1, %v2363_v5, 0.0 }
 0xd84   :  { %v2365_v6 = vpop.eup %2364 }
 0xd85   :  { %v1587_v37 = vsel %vm51_vm1, %v2365_v6, 0.0 }
 0xd86   :  { %1591 = vadd.xlane.f32.xlu1 %v1590_v33  ;;  %1588 = vadd.xlane.f32.xlu0 %v1587_v37 }
 0xd97   :  { %1316 = vrot.lane.b32.xlu1 %v2603_v32, %s2384_s22 }
 0xd9b   :  { %1457 = vrot.lane.b32.xlu1 %v2500_v53, %s2384_s22 }
 0xd9c   :  { %1314 = vrot.lane.b32.xlu0 %v2605_v35, %s2384_s22 }
 0xd9f   :  { %1600 = vrot.lane.b32.xlu1 %v2648_v48, %s2384_s22 }
 0xda0   :  { %1459 = vrot.lane.b32.xlu0 %v2498_v51, %s2384_s22 }
 0xda4   :  { %1602 = vrot.lane.b32.xlu0 %v2504_v57, %s2384_s22 }
 0xe03   :  { %v1303_v7 = vpop.xlane.xlu0 %1302 }
 0xe04   :  { %2366 = vrcp.f32 %v1303_v7 }
 0xe07   :  { %v1449_v8 = vpop.xlane.xlu1 %1448 }
 0xe08   :  { %2368 = vrcp.f32 %v1449_v8 }
 0xe0b   :  { %v1306_v32 = vpop.xlane.xlu1 %1305  ;;  %v1446_v47 = vpop.xlane.xlu0 %1445 }
 0xe0c   :  { %2370 = vrcp.f32 %v1306_v32 }
 0xe0d   :  { %2372 = vrcp.f32 %v1446_v47 }
 0xe0f   :  { %v1592_v53 = vpop.xlane.xlu1 %1591  ;;  %v1589_v14 = vpop.xlane.xlu0 %1588 }
 0xe10   :  { %2374 = vrcp.f32 %v1592_v53 }
 0xe11   :  { %2376 = vrcp.f32 %v1589_v14  ;;  %v2367_v48 = vpop.eup %2366 }
 0xe12   :  { %v1309_v57 = vmul.f32 %v2367_v48, %v2355_v13  ;;  %v2385_v48 = vmov 0  }
 0xe13   :  { %v1315_v35 = vpop.permute.xlu0 %1314  ;;  %v1317_v19 = vpop.permute.xlu1 %1316  ;;  %2282 = vset.pattern.permute.xlu1 %v2385_v48  ;;  %2283 = vset.pattern.permute.xlu0 %v2385_v48 }
 0xe14   :  { %2170 = vmatprep.mubr.msk.bf16.mxu1 %vm51_vm1, %v1315_v35  ;;  %v2312_v35 = vld [vmem:[%s2877_s2] sm:$0xff]  }
 0xe15   :  { %v2369_v51 = vpop.eup %2368  ;;  %2218 = vmatprep.mubr.bf16.mxu0 %v2312_v35 }
 0xe16   :  { %v1453_v31 = vmul.f32 %v2369_v51, %v2357_v52  ;;  %v1754_v51 = vld [vmem:[%s2878_s3] sm:$0xff] }
 0xe17   :  { %v1458_v23 = vpop.permute.xlu1 %1457  ;;  %v1460_v26 = vpop.permute.xlu0 %1459 }
 0xe19   :  { %v2371_v9 = vpop.eup %2370 }
 0xe1a   :  { %v2373_v10 = vpop.eup %2372  ;;  %v1310_v16 = vmul.f32 %v2371_v9, %v2359_v61 }
 0xe1b   :  { %v1452_v11 = vmul.f32 %v2373_v10, %v2361_v62  ;;  %v1601_v36 = vpop.permute.xlu1 %1600  ;;  %v1603_v2 = vpop.permute.xlu0 %1602 }
 0xe1c   :  { %v1311_v12 = vpack.c.bf16 %v1310_v16, %v1309_v57 }
 0xe1d   :  { %v2375_v44 = vpop.eup %2374  ;;  %v1454_v18 = vpack.c.bf16 %v1453_v31, %v1452_v11 }
 0xe1e   :  { %2231 = vmatprep.subr.msk.bf16.mxu1 %vm51_vm1, %v1311_v12  ;;  %v1325_v17 = vsel %vm51_vm1, %v1311_v12, 0  ;;  %v2377_v39 = vpop.eup %2376  ;;  %v1596_v22 = vmul.f32 %v2375_v44, %v2363_v5 }
 0xe1f   :  { %2169 = vmatpush3.bf16.xpose.msra.mxu1 %v1325_v17  ;;  %v1595_v20 = vmul.f32 %v2377_v39, %v2365_v6  ;;  %v1468_v24 = vsel %vm51_vm1, %v1454_v18, 0 }
 0xe20   :  { %2232 = vmatprep.subr.msk.bf16.mxu1 %vm51_vm1, %v1454_v18 }
 0xe21   :  { %v1597_v25 = vpack.c.bf16 %v1596_v22, %v1595_v20 }
 0xe23   :  { %v1611_v21 = vsel %vm51_vm1, %v1597_v25, 0 }
 0xe26   :  { %2171 = vmatmul.mubr.msk.bf16.vlgmr.msra.gmra.mxu1 %vm51_vm1, %v1317_v19 }
 0xe27   :  { %2183 = vmatpush3.bf16.xpose.msra.mxu1 %v1468_v24  ;;  %2184 = vmatprep.mubr.msk.bf16.mxu1 %vm51_vm1, %v1458_v23 }
 0xe28   :  { %2233 = vmatprep.subr.msk.bf16.mxu1 %vm51_vm1, %v1597_v25 }
 0xe2e   :  { %2185 = vmatmul.mubr.msk.bf16.vlgmr.msra.gmra.mxu1 %vm51_vm1, %v1460_v26 }
 0xe2f   :  { %2197 = vmatpush3.bf16.xpose.msra.mxu1 %v1611_v21  ;;  %2198 = vmatprep.mubr.msk.bf16.mxu1 %vm51_vm1, %v1601_v36 }
 0xe36   :  { %2199 = vmatmul.mubr.msk.bf16.vlgmr.msra.gmra.mxu1 %vm51_vm1, %v1603_v2 }
 0xee6   :  { %v2172_v13 = vpop.f32.mrf.mxu1 }
 0xee8   :  { %v1361_v15 = vpop.f32.mrf.mxu1 }
 0xeea   :  { %v2173_v52 = vpop.f32.mrf.mxu1 }
 0xeeb   :  { %v2262_v53 = vpack.i.bf16 %v2173_v52, %v2172_v13 }
 0xeec   :  { %v1364_v60 = vpop.f32.mrf.mxu1 }
 0xeed   :  { %v2267_v14 = vpack.i.bf16 %v1364_v60, %v1361_v15 }
 0xeee   :  { %v2186_v61 = vpop.f32.mrf.mxu1 }
 0xef0   :  { %v1504_v62 = vpop.f32.mrf.mxu1 }
 0xef2   :  { %v2187_v63 = vpop.f32.mrf.mxu1 }
 0xef3   :  { %v2252_v32 = vpack.i.bf16 %v2187_v63, %v2186_v61 }
 0xef4   :  { %v1507_v5 = vpop.f32.mrf.mxu1 }
 0xef5   :  { %v2257_v47 = vpack.i.bf16 %v1507_v5, %v1504_v62 }
 0xef6   :  { %v2200_v45 = vpop.f32.mrf.mxu1 }
 0xef8   :  { %v1647_v6 = vpop.f32.mrf.mxu1 }
 0xefa   :  { %v2201_v33 = vpop.f32.mrf.mxu1 }
 0xefb   :  { %v2242_v37 = vpack.i.bf16 %v2201_v33, %v2200_v45 }
 0xefc   :  { %v1650_v7 = vpop.f32.mrf.mxu1 }
 0xefd   :  { %v2247_v8 = vpack.i.bf16 %v1650_v7, %v1647_v6  ;;  %2243 = vrot.lane.b32.xlu1 %v2242_v37, %s2378_s17 }
 0xeff   :  { %2248 = vrot.lane.b32.xlu0 %v2247_v8, %s2378_s17 }
 0xf01   :  { %2253 = vrot.lane.b32.xlu1 %v2252_v32, %s2378_s17 }
 0xf03   :  { %2258 = vrot.lane.b32.xlu0 %v2257_v47, %s2378_s17 }
 0xf05   :  { %2263 = vrot.lane.b32.xlu1 %v2262_v53, %s2378_s17 }
 0xf07   :  { %2268 = vrot.lane.b32.xlu0 %v2267_v14, %s2378_s17 }
 0xf09   :  { %2273 = vrot.lane.b32.xlu1 %v2272_v49, %s2378_s17 }
 0xf0b   :  { %2278 = vrot.lane.b32.xlu0 %v2277_v55, %s2378_s17 }
 0xf0d   :  { %1760 = vperm.xlu1 %2282, %v1754_v51  }
 0xf0f   :  { %1765 = vperm.xlu0 %2283, %v1755_v42  }
 0xf11   :  { %1770 = vperm.xlu1 %2282, %v1756_v34  }
 0xf15   :  { %1775 = vperm.xlu1 %2282, %v1757_v46  }
 0xf6f   :  { %v2244_v49 = vpop.permute.xlu1 %2243 }
 0xf70   :  { %v2246_v50 = vunpack.i.h.bf16 %v2244_v49  ;;  %v2245_v55 = vunpack.i.l.bf16 %v2244_v49 }
 0xf71   :  { %v2249_v9 = vpop.permute.xlu0 %2248 }
 0xf72   :  { %v2251_v10 = vunpack.i.h.bf16 %v2249_v9  ;;  %v2250_v57 = vunpack.i.l.bf16 %v2249_v9  ;;  %v1740_v16 = vsel %vm51_vm1, %v2680_v27, %v2245_v55  ;;  %v1741_v11 = vsel %vm51_vm1, %v2684_v29, %v2246_v50 }
 0xf73   :  { %v2254_v12 = vpop.permute.xlu1 %2253  ;;  %v1749_v31 = vpack.c.bf16 %v1741_v11, %v1740_v16 }
 0xf74   :  { %v2256_v44 = vunpack.i.h.bf16 %v2254_v12  ;;  %v2255_v17 = vunpack.i.l.bf16 %v2254_v12  ;;  %v1738_v18 = vsel %vm51_vm1, %v2682_v28, %v2250_v57  ;;  %v1739_v39 = vsel %vm51_vm1, %v2686_v30, %v2251_v10 }
 0xf75   :  { %2202 = vmatprep.subr.bf16.mxu0 %v1749_v31  ;;  %v2259_v19 = vpop.permute.xlu0 %2258  ;;  %v1748_v20 = vpack.c.bf16 %v1739_v39, %v1738_v18 }
 0xf76   :  { %v2261_v22 = vunpack.i.h.bf16 %v2259_v19  ;;  %v2260_v23 = vunpack.i.l.bf16 %v2259_v19  ;;  %2203 = vmatpush3.bf16.msra.mxu0 %v1749_v31  ;;  %v1736_v27 = vsel %vm51_vm1, %v2653_v38, %v2255_v17  ;;  %v1737_v29 = vsel %vm51_vm1, %v2657_v41, %v2256_v44 }
 0xf77   :  { %v2264_v24 = vpop.permute.xlu1 %2263  ;;  %2204 = vmatprep.subr.bf16.mxu0 %v1748_v20  ;;  %v1747_v25 = vpack.c.bf16 %v1737_v29, %v1736_v27 }
 0xf78   :  { %v2266_v26 = vunpack.i.h.bf16 %v2264_v24  ;;  %v2265_v28 = vunpack.i.l.bf16 %v2264_v24  ;;  %v1734_v30 = vsel %vm51_vm1, %v2655_v40, %v2260_v23  ;;  %v1735_v36 = vsel %vm51_vm1, %v2659_v43, %v2261_v22 }
 0xf79   :  { %v2269_v21 = vpop.permute.xlu0 %2268  ;;  %v1746_v2 = vpack.c.bf16 %v1735_v36, %v1734_v30 }
 0xf7a   :  { %2205 = vmatpush3.bf16.msra.mxu0 %v1748_v20  ;;  %v2271_v13 = vunpack.i.h.bf16 %v2269_v21  ;;  %v2270_v38 = vunpack.i.l.bf16 %v2269_v21  ;;  %v1732_v41 = vsel %vm51_vm1, %v2622_v54, %v2265_v28  ;;  %v1733_v15 = vsel %vm51_vm1, %v2626_v58, %v2266_v26 }
 0xf7b   :  { %2206 = vmatprep.subr.bf16.mxu0 %v1747_v25  ;;  %v2274_v52 = vpop.permute.xlu1 %2273  ;;  %v1745_v60 = vpack.c.bf16 %v1733_v15, %v1732_v41 }
 0xf7c   :  { %v2276_v61 = vunpack.i.h.bf16 %v2274_v52  ;;  %v2275_v40 = vunpack.i.l.bf16 %v2274_v52  ;;  %v1730_v43 = vsel %vm51_vm1, %v2624_v56, %v2270_v38  ;;  %v1731_v62 = vsel %vm51_vm1, %v2628_v59, %v2271_v13 }
 0xf7d   :  { %v2279_v63 = vpop.permute.xlu0 %2278  ;;  %v1744_v5 = vpack.c.bf16 %v1731_v62, %v1730_v43 }
 0xf7e   :  { %2207 = vmatpush3.bf16.msra.mxu0 %v1747_v25  ;;  %v2281_v45 = vunpack.i.h.bf16 %v2279_v63  ;;  %v2280_v54 = vunpack.i.l.bf16 %v2279_v63  ;;  %v1728_v58 = vsel %vm51_vm1, %v2585_v0, %v2275_v40  ;;  %v1729_v6 = vsel %vm51_vm1, %v2589_v3, %v2276_v61  ;;  %v2313_v0 = vld [vmem:[%s2877_s2 + $0x8] sm:$0xff]  }
 0xf7f   :  { %2208 = vmatprep.subr.bf16.mxu0 %v1746_v2  ;;  %v1743_v33 = vpack.c.bf16 %v1729_v6, %v1728_v58 }
 0xf80   :  { %v1726_v56 = vsel %vm51_vm1, %v2587_v1, %v2280_v54  ;;  %v1727_v59 = vsel %vm51_vm1, %v2591_v4, %v2281_v45 }
 0xf81   :  { %v1742_v37 = vpack.c.bf16 %v1727_v59, %v1726_v56 }
 0xf82   :  { %2209 = vmatpush3.bf16.msra.mxu0 %v1746_v2 }
 0xf83   :  { %2210 = vmatprep.subr.bf16.mxu0 %v1745_v60 }
 0xf86   :  { %2211 = vmatpush3.bf16.msra.mxu0 %v1745_v60 }
 0xf87   :  { %2212 = vmatprep.subr.bf16.mxu0 %v1744_v5 }
 0xf88   :  { %v1761_v3 = vpop.permute.xlu1 %1760 }
 0xf8a   :  { %2213 = vmatpush3.bf16.msra.mxu0 %v1744_v5  ;;  %v1766_v14 = vpop.permute.xlu0 %1765 }
 0xf8b   :  { %2214 = vmatprep.subr.bf16.mxu0 %v1743_v33 }
 0xf8c   :  { %v1771_v7 = vpop.permute.xlu1 %1770 }
 0xf8e   :  { %2215 = vmatpush3.bf16.msra.mxu0 %v1743_v33 }
 0xf8f   :  { %2216 = vmatprep.subr.bf16.mxu0 %v1742_v37 }
 0xf90   :  { %v1776_v1 = vpop.permute.xlu1 %1775 }
 0xf92   :  { %2217 = vmatpush3.bf16.msra.mxu0 %v1742_v37 }
 0xf95   :  { %2219 = vmatmul.mubr.bf16.vlgmr.msra.gmra.mxu0 %v2313_v0 }
0x1055   :  { %v2220_v8 = vpop.f32.mrf.mxu0 }
0x1056   :  { %v1833_v32 = vadd.f32 %v2220_v8, %v1771_v7 }
0x1057   :  { %v1824_v47 = vpop.f32.mrf.mxu0 }
0x1058   :  { %v1825_v53 = vadd.f32 %v1824_v47, %v1761_v3  ;;  %1841 = vst.msk [vmem:[%s2879_s4 + $0x10] sm:$0xff] %vm51_vm1, %v1833_v32 }
0x1059   :  { %v2221_v4 = vpop.f32.mrf.mxu0 }
0x105a   :  { %1839 = vst.msk [vmem:[%s2879_s4] sm:$0xff] %vm51_vm1, %v1825_v53  ;;  %1847 = vrot.lane.b32.xlu0 %v1825_v53, %s2384_s22  ;;  %v1836_v35 = vadd.f32 %v2221_v4, %v1776_v1 }
0x105b   :  { %v1827_v48 = vpop.f32.mrf.mxu0 }
0x105c   :  { %v1828_v51 = vadd.f32 %v1827_v48, %v1766_v14  ;;  %1842 = vst.msk [vmem:[%s2879_s4 + $0x18] sm:$0xff] %vm51_vm1, %v1836_v35 }
0x105e   :  { %1840 = vst.msk [vmem:[%s2879_s4 + $0x8] sm:$0xff] %vm51_vm1, %v1828_v51  ;;  %1849 = vrot.lane.b32.xlu1 %v1828_v51, %s2384_s22  ;;  %1851 = vrot.lane.b32.xlu0 %v1833_v32, %s2384_s22 }
0x1062   :  { %1853 = vrot.lane.b32.xlu1 %v1836_v35, %s2384_s22 }
0x10cc   :  { %v1848_v42 = vpop.permute.xlu0 %1847 }
0x10cd   :  { %1950 = vst.msk [vmem:[%s2879_s4 + $0x20] sm:$0xff] %vm51_vm1, %v1848_v42 }
0x10d0   :  { %v1850_v34 = vpop.permute.xlu1 %1849  ;;  %v1852_v46 = vpop.permute.xlu0 %1851 }
0x10d1   :  { %1951 = vst.msk [vmem:[%s2879_s4 + $0x28] sm:$0xff] %vm51_vm1, %v1850_v34  ;;  %1952 = vst.msk [vmem:[%s2879_s4 + $0x30] sm:$0xff] %vm51_vm1, %v1852_v46 }
0x10d4   :  { %v1854_v49 = vpop.permute.xlu1 %1853 }
0x10d5   :  { %1953 = vst.msk [vmem:[%s2879_s4 + $0x38] sm:$0xff] %vm51_vm1, %v1854_v49 }

</bundles_post_ra>
